<compile_context>
chip_gen: v7x
topology: tpu7x:2x2x1
jax: 0.10.0
libtpu: 0.0.40
codegen_flags: <defaults>
</compile_context>

<pallas_src>
import functools

import jax
import jax.numpy as jnp
from jax.experimental import pallas as pl
from jax.experimental.pallas import tpu as pltpu

LANE = 128
SUBLANE = 8


def _round_up(x, m):
    return ((x + m - 1) // m) * m


# ---------------------------------------------------------------------------
# Fused kernel (all layers in one body; weights resident in VMEM)
# ---------------------------------------------------------------------------
def _make_fused_mlp_kernel(num_layers):
    """Returns kernel(x_ref, w_0..w_{L-1}, b_0..b_{L-1}, o_ref)."""

    def kernel(*refs):
        x_ref = refs[0]
        w_refs = refs[1:1 + num_layers]
        b_refs = refs[1 + num_layers:1 + 2 * num_layers]
        o_ref = refs[1 + 2 * num_layers]

        # Cast to bf16 in-kernel (cheap VPU op, hidden under the MXU);
        # avoids a wrapper-side pad/cast HBM round trip.
        h = x_ref[...].astype(jnp.bfloat16)  # (tile_n, in_C)

        # Hidden layers: Linear (BN folded) + ReLU.  Epilogue in f32, MXU in bf16.
        for i in range(num_layers - 1):
            y = jnp.dot(h, w_refs[i][...], preferred_element_type=jnp.float32)
            y = y + b_refs[i][...]
            h = jnp.maximum(y, 0.0).astype(jnp.bfloat16)
            # TODO(synk): dropout omitted (module evaluated with training=False -> identity)

        # Final Linear + log_softmax.  Padded logit columns are masked via the
        # pre-folded -1e30 bias (weights there are 0), so no iota/where needed.
        logits = jnp.dot(h, w_refs[-1][...], preferred_element_type=jnp.float32)
        logits = logits + b_refs[-1][...]
        m = jnp.max(logits, axis=-1, keepdims=True)
        shifted = logits - m
        lse = jnp.log(jnp.sum(jnp.exp(shifted), axis=-1, keepdims=True))
        o_ref[...] = (shifted - lse).astype(o_ref.dtype)

    return kernel


# ---------------------------------------------------------------------------
# Wrapper: row-tiled grid, weights broadcast to every grid step
# ---------------------------------------------------------------------------
@functools.partial(jax.jit, static_argnames=("tile_n", "out_dtype"))
def mlp_forward(x, ws, bs, *, tile_n=1024, out_dtype=jnp.bfloat16):
    """x: (N, in_C) f32 (native layout, no padding needed).
    ws/bs: folded + lane-padded params from prepare_fused_params.
    Returns (N, out_p) log-probs; padded columns hold large-negative values and
    should be sliced off by the caller ([:, :out_channels])."""
    n, f_in = x.shape
    num_layers = len(ws)
    assert ws[0].shape[0] == f_in, "first-layer weight K dim must match x features"
    out_p = ws[-1].shape[1]

    # Clamp the row tile for small inputs; keep it a multiple of 16 (bf16 packing).
    tile_n = min(tile_n, _round_up(n, 2 * SUBLANE))
    assert tile_n % (2 * SUBLANE) == 0, "tile_n must be a multiple of 16"

    grid = (pl.cdiv(n, tile_n),)  # ragged last tile handled by Pallas masking
    kernel = _make_fused_mlp_kernel(num_layers)

    in_specs = [pl.BlockSpec((tile_n, f_in), lambda i: (i, 0))]
    for w in ws:
        in_specs.append(pl.BlockSpec(w.shape, lambda i: (0, 0)))   # resident in VMEM
    for b in bs:
        in_specs.append(pl.BlockSpec(b.shape, lambda i: (0, 0)))   # resident in VMEM

    out = pl.pallas_call(
        kernel,
        out_shape=jax.ShapeDtypeStruct((n, out_p), out_dtype),
        grid=grid,
        in_specs=in_specs,
        out_specs=pl.BlockSpec((tile_n, out_p), lambda i: (i, 0)),
        compiler_params=pltpu.CompilerParams(
            dimension_semantics=("parallel",),        # shard row tiles across TCs (v7x)
            vmem_limit_bytes=48 * 1024 * 1024,        # explicit, safe on 64 MiB v7x VMEM
        ),
    )(x, *ws, *bs)

    return out


# ---------------------------------------------------------------------------
# Parameters: logical (torch-like) init + fold/pad/cast for the fused kernel
# ---------------------------------------------------------------------------
def init_mlp_params(key, in_channels, hidden_channels, out_channels, num_layers):
    """Deterministic synthetic params with the same shapes as the torch module."""
    dims = [in_channels] + [hidden_channels] * (num_layers - 1) + [out_channels]
    params = []
    eps = 1e-5
    for i in range(num_layers):
        key, kw, kb, kg, kbeta = jax.random.split(key, 5)
        fan_in, fan_out = dims[i], dims[i + 1]
        # Linear weight stored as (fan_in, fan_out) == torch weight.T
        w = jax.random.normal(kw, (fan_in, fan_out), jnp.float32) * (fan_in ** -0.5)
        b = jax.random.normal(kb, (1, fan_out), jnp.float32) * 0.01
        layer = {"w": w, "b": b}
        if i < num_layers - 1:
            # BatchNorm1d eval-mode parameters -> scale/shift.
            gamma = 1.0 + 0.1 * jax.random.normal(kg, (1, fan_out), jnp.float32)
            beta = 0.1 * jax.random.normal(kbeta, (1, fan_out), jnp.float32)
            running_mean = jnp.zeros((1, fan_out), jnp.float32)
            running_var = jnp.ones((1, fan_out), jnp.float32)
            scale = gamma / jnp.sqrt(running_var + eps)
            shift = beta - running_mean * scale
            layer["scale"] = scale
            layer["shift"] = shift
        params.append(layer)
    return params


def prepare_fused_params(params):
    """Fold BN into Linear, pad feature dims to 128-lane multiples, cast W to bf16.

    * First layer keeps its unpadded K dim so x can be fed in native layout.
    * Last layer's padded bias columns are set to -1e30 (weights there are 0)
      so the log_softmax epilogue needs no explicit pad mask.
    NOTE: on v6e/v7x, padding hidden widths to 256 (MXU width) instead of 128
    fills the MXU better when the width is not already a 256 multiple.
    """
    ws, bs = [], []
    num_layers = len(params)
    prev_out_p = None
    for idx, layer in enumerate(params):
        w = layer["w"]
        b = layer["b"]
        if "scale" in layer:
            # (x@W + b)*scale + shift == x@(W*scale) + (b*scale + shift)
            w = w * layer["scale"]
            b = b * layer["scale"] + layer["shift"]
        f_in, f_out = w.shape
        in_p = f_in if idx == 0 else prev_out_p          # match previous padded width
        out_p = _round_up(f_out, LANE)
        wp = jnp.zeros((in_p, out_p), jnp.float32).at[:f_in, :f_out].set(w)
        bp = jnp.zeros((1, out_p), jnp.float32).at[:, :f_out].set(b)
        if idx == num_layers - 1 and out_p > f_out:
            # Fold the pad-column mask into the bias (large finite negative).
            bp = bp.at[:, f_out:].set(-1e30)
        ws.append(wp.astype(jnp.bfloat16))   # MXU input dtype
        bs.append(bp)                         # keep bias f32 for the epilogue
        prev_out_p = out_p
    return tuple(ws), tuple(bs)


# Pure-JAX f32 reference for sanity checking.
def mlp_forward_ref(params, x):
    for layer in params[:-1]:
        y = x @ layer["w"] + layer["b"]
        y = y * layer["scale"] + layer["shift"]
        x = jnp.maximum(y, 0.0)
    last = params[-1]
    logits = x @ last["w"] + last["b"]
    return jax.nn.log_softmax(logits, axis=-1)


if __name__ == "__main__":
    # Small shapes: lane padding, multi-step grid AND a ragged last row tile
    # (384 rows with tile_n=256 -> tiles of 256 and 128) are all exercised.
    N, IN_C, HID_C, OUT_C, NUM_LAYERS = 384, 16, 32, 8, 3

    key = jax.random.PRNGKey(0)
    key, kx = jax.random.split(key)
    x = jax.random.normal(kx, (N, IN_C), jnp.float32)

    params = init_mlp_params(key, IN_C, HID_C, OUT_C, NUM_LAYERS)
    ws, bs = prepare_fused_params(params)

    out_padded = mlp_forward(x, ws, bs, tile_n=256)
    out_padded = jax.block_until_ready(out_padded)

    assert out_padded.shape == (N, ws[-1].shape[1])
    out = out_padded[:, :OUT_C].astype(jnp.float32)   # slice off padded log-prob columns

    ref = mlp_forward_ref(params, x)
    # bf16 matmul inputs + bf16 output -> loose tolerance vs f32 reference
    assert jnp.allclose(out, ref, atol=1e-1, rtol=1e-1), "mismatch vs reference"
    # log_softmax rows must sum (in prob space) to ~1 (bf16 output => looser atol)
    assert jnp.allclose(jnp.sum(jnp.exp(out), axis=-1), 1.0, atol=3e-2)

    print("KERNEL_OK")
</pallas_src>

<mosaic_0001>
module attributes {stable_mosaic.version = 11 : i64} {
  func.func @kernel(%arg0: i32, %arg1: memref<256x16xf32, #tpu.memory_space<vmem>>, %arg2: memref<16x128xbf16, #tpu.memory_space<vmem>>, %arg3: memref<128x128xbf16, #tpu.memory_space<vmem>>, %arg4: memref<128x128xbf16, #tpu.memory_space<vmem>>, %arg5: memref<1x128xf32, #tpu.memory_space<vmem>>, %arg6: memref<1x128xf32, #tpu.memory_space<vmem>>, %arg7: memref<1x128xf32, #tpu.memory_space<vmem>>, %arg8: memref<256x128xbf16, #tpu.memory_space<vmem>>) attributes {dimension_semantics = [#tpu.dimension_semantics<parallel>], iteration_bounds = array<i64: 2>, scalar_prefetch = 0 : i64, scratch_operands = 0 : i64, tpu.core_type = #tpu.core_type<tc>, window_params = [{transform_indices = @transform_0, window_bounds = array<i64: 256, 16>}, {pipeline_mode = #tpu.pipeline_mode<synchronous>, transform_indices = @transform_1, window_bounds = array<i64: 16, 128>}, {pipeline_mode = #tpu.pipeline_mode<synchronous>, transform_indices = @transform_2, window_bounds = array<i64: 128, 128>}, {pipeline_mode = #tpu.pipeline_mode<synchronous>, transform_indices = @transform_3, window_bounds = array<i64: 128, 128>}, {pipeline_mode = #tpu.pipeline_mode<synchronous>, transform_indices = @transform_4, window_bounds = array<i64: 1, 128>}, {pipeline_mode = #tpu.pipeline_mode<synchronous>, transform_indices = @transform_5, window_bounds = array<i64: 1, 128>}, {pipeline_mode = #tpu.pipeline_mode<synchronous>, transform_indices = @transform_6, window_bounds = array<i64: 1, 128>}, {transform_indices = @transform_7, window_bounds = array<i64: 256, 128>}]} {
    %c0 = arith.constant 0 : index
    %c0_0 = arith.constant 0 : index
    %0 = vector.load %arg1[%c0, %c0_0] : memref<256x16xf32, #tpu.memory_space<vmem>>, vector<256x16xf32>
    %1 = arith.truncf %0 : vector<256x16xf32> to vector<256x16xbf16>
    %c0_1 = arith.constant 0 : index
    %c0_2 = arith.constant 0 : index
    %2 = vector.load %arg2[%c0_1, %c0_2] : memref<16x128xbf16, #tpu.memory_space<vmem>>, vector<16x128xbf16>
    %cst = arith.constant dense<0.000000e+00> : vector<256x128xf32>
    %3 = tpu.matmul %1, %2, %cst {dimension_numbers = #tpu.dot_dimension_numbers<[1], [0], [0], [1], [0, 0, 1, 1], [], []>} : vector<256x16xbf16>, vector<16x128xbf16>, vector<256x128xf32> -> vector<256x128xf32>
    %c0_3 = arith.constant 0 : index
    %c0_4 = arith.constant 0 : index
    %4 = vector.load %arg5[%c0_3, %c0_4] : memref<1x128xf32, #tpu.memory_space<vmem>>, vector<1x128xf32>
    %5 = vector.broadcast %4 : vector<1x128xf32> to vector<256x128xf32>
    %6 = arith.addf %3, %5 : vector<256x128xf32>
    %cst_5 = arith.constant 0.000000e+00 : f32
    %7 = vector.broadcast %cst_5 : f32 to vector<256x128xf32>
    %8 = arith.maximumf %6, %7 : vector<256x128xf32>
    %9 = arith.truncf %8 : vector<256x128xf32> to vector<256x128xbf16>
    %c0_6 = arith.constant 0 : index
    %c0_7 = arith.constant 0 : index
    %10 = vector.load %arg3[%c0_6, %c0_7] : memref<128x128xbf16, #tpu.memory_space<vmem>>, vector<128x128xbf16>
    %cst_8 = arith.constant dense<0.000000e+00> : vector<256x128xf32>
    %11 = tpu.matmul %9, %10, %cst_8 {dimension_numbers = #tpu.dot_dimension_numbers<[1], [0], [0], [1], [0, 0, 1, 1], [], []>} : vector<256x128xbf16>, vector<128x128xbf16>, vector<256x128xf32> -> vector<256x128xf32>
    %c0_9 = arith.constant 0 : index
    %c0_10 = arith.constant 0 : index
    %12 = vector.load %arg6[%c0_9, %c0_10] : memref<1x128xf32, #tpu.memory_space<vmem>>, vector<1x128xf32>
    %13 = vector.broadcast %12 : vector<1x128xf32> to vector<256x128xf32>
    %14 = arith.addf %11, %13 : vector<256x128xf32>
    %cst_11 = arith.constant 0.000000e+00 : f32
    %15 = vector.broadcast %cst_11 : f32 to vector<256x128xf32>
    %16 = arith.maximumf %14, %15 : vector<256x128xf32>
    %17 = arith.truncf %16 : vector<256x128xf32> to vector<256x128xbf16>
    %c0_12 = arith.constant 0 : index
    %c0_13 = arith.constant 0 : index
    %18 = vector.load %arg4[%c0_12, %c0_13] : memref<128x128xbf16, #tpu.memory_space<vmem>>, vector<128x128xbf16>
    %cst_14 = arith.constant dense<0.000000e+00> : vector<256x128xf32>
    %19 = tpu.matmul %17, %18, %cst_14 {dimension_numbers = #tpu.dot_dimension_numbers<[1], [0], [0], [1], [0, 0, 1, 1], [], []>} : vector<256x128xbf16>, vector<128x128xbf16>, vector<256x128xf32> -> vector<256x128xf32>
    %c0_15 = arith.constant 0 : index
    %c0_16 = arith.constant 0 : index
    %20 = vector.load %arg7[%c0_15, %c0_16] : memref<1x128xf32, #tpu.memory_space<vmem>>, vector<1x128xf32>
    %21 = vector.broadcast %20 : vector<1x128xf32> to vector<256x128xf32>
    %22 = arith.addf %19, %21 : vector<256x128xf32>
    %cst_17 = arith.constant dense<0xFF800000> : vector<256xf32>
    %23 = vector.multi_reduction <maximumf>, %22, %cst_17 [1] : vector<256x128xf32> to vector<256xf32>
    %24 = vector.shape_cast %23 : vector<256xf32> to vector<256x1xf32>
    %25 = vector.broadcast %24 : vector<256x1xf32> to vector<256x128xf32>
    %26 = arith.subf %22, %25 : vector<256x128xf32>
    %27 = math.exp %26 : vector<256x128xf32>
    %cst_18 = arith.constant dense<0.000000e+00> : vector<256xf32>
    %28 = vector.multi_reduction <add>, %27, %cst_18 [1] : vector<256x128xf32> to vector<256xf32>
    %29 = vector.shape_cast %28 : vector<256xf32> to vector<256x1xf32>
    %30 = math.log %29 : vector<256x1xf32>
    %31 = vector.broadcast %30 : vector<256x1xf32> to vector<256x128xf32>
    %32 = arith.subf %26, %31 : vector<256x128xf32>
    %33 = arith.truncf %32 : vector<256x128xf32> to vector<256x128xbf16>
    %c0_19 = arith.constant 0 : index
    %c0_20 = arith.constant 0 : index
    %34 = vector.load %arg8[%c0_19, %c0_20] : memref<256x128xbf16, #tpu.memory_space<vmem>>, vector<256x128xbf16>
    tpu.vector_store %arg8[%c0_19, %c0_20], %33 {strides = array<i32>} : memref<256x128xbf16, #tpu.memory_space<vmem>>, vector<256x128xbf16>,
    return
  }
  func.func @transform_0(%arg0: i32) -> (i32, i32) {
    %c0_i32 = arith.constant 0 : i32
    %c0_i32_0 = arith.constant 0 : i32
    return %arg0, %c0_i32 : i32, i32
  }
  func.func @transform_1(%arg0: i32) -> (i32, i32) {
    %c0_i32 = arith.constant 0 : i32
    %c0_i32_0 = arith.constant 0 : i32
    %c0_i32_1 = arith.constant 0 : i32
    return %c0_i32, %c0_i32_0 : i32, i32
  }
  func.func @transform_2(%arg0: i32) -> (i32, i32) {
    %c0_i32 = arith.constant 0 : i32
    %c0_i32_0 = arith.constant 0 : i32
    %c0_i32_1 = arith.constant 0 : i32
    return %c0_i32, %c0_i32_0 : i32, i32
  }
  func.func @transform_3(%arg0: i32) -> (i32, i32) {
    %c0_i32 = arith.constant 0 : i32
    %c0_i32_0 = arith.constant 0 : i32
    %c0_i32_1 = arith.constant 0 : i32
    return %c0_i32, %c0_i32_0 : i32, i32
  }
  func.func @transform_4(%arg0: i32) -> (i32, i32) {
    %c0_i32 = arith.constant 0 : i32
    %c0_i32_0 = arith.constant 0 : i32
    %c0_i32_1 = arith.constant 0 : i32
    return %c0_i32, %c0_i32_0 : i32, i32
  }
  func.func @transform_5(%arg0: i32) -> (i32, i32) {
    %c0_i32 = arith.constant 0 : i32
    %c0_i32_0 = arith.constant 0 : i32
    %c0_i32_1 = arith.constant 0 : i32
    return %c0_i32, %c0_i32_0 : i32, i32
  }
  func.func @transform_6(%arg0: i32) -> (i32, i32) {
    %c0_i32 = arith.constant 0 : i32
    %c0_i32_0 = arith.constant 0 : i32
    %c0_i32_1 = arith.constant 0 : i32
    return %c0_i32, %c0_i32_0 : i32, i32
  }
  func.func @transform_7(%arg0: i32) -> (i32, i32) {
    %c0_i32 = arith.constant 0 : i32
    %c0_i32_0 = arith.constant 0 : i32
    return %arg0, %c0_i32 : i32, i32
  }
}

</mosaic_0001>

<bundles_post_ra>
// kernel: mlp_forward.1
= control target key start
LH: loop header
LB: loop body
LE: loop exit
PB: predicated region body
PF: predicated region fallthrough
CT: control target
= control target key end

     0   :  { %12 = vsyncpa [#allocation3], 0  ;;  %s3015_s0 = inlined_call_operand.vmem [shape: f32[384,16], index: 0, kind: input, shape index: {}]   ;;  %s3016_s1 = inlined_call_operand.vmem [shape: bf16[16,128], index: 1, kind: input, shape index: {}]   ;;  %s3017_s2 = inlined_call_operand.vmem [shape: bf16[128,128], index: 2, kind: input, shape index: {}]   ;;  %s3018_s3 = inlined_call_operand.vmem [shape: bf16[128,128], index: 3, kind: input, shape index: {}]   ;;  %s3019_s4 = inlined_call_operand.vmem [shape: f32[1,128], index: 4, kind: input, shape index: {}]   ;;  %s3020_s5 = inlined_call_operand.vmem [shape: f32[1,128], index: 5, kind: input, shape index: {}]   ;;  %s3021_s6 = inlined_call_operand.vmem [shape: f32[1,128], index: 6, kind: input, shape index: {}]   ;;  %s3022_s7 = inlined_call_operand.hbm [shape: bf16[384,128], index: 7, kind: output, shape index: {}]  }
   0x1   :  { %14 = vsyncpa [#allocation3 + $0x1], 0  ;;  %s2401_s24 = smov 0   ;;  %s2403_s25 = smov 0  }
   0x2   :  { %s2405_s26 = smov 0   ;;  %s2407_s27 = smov 0  }
   0x3 LB: > { %s2422_s28 = sadd.s32 4294967295, %s2356_s27   ;;  %s1700_s29 = sadd.s32 4294967294, %s2356_s27   ;;  %s2356_s27 = sphi %s2407_s27, %s3028_s27   ;;  %s2352_s26 = sphi %s2405_s26, %s3027_s26   ;;  %s2348_s25 = sphi %s2403_s25, %s3026_s25   ;;  %s2344_s24 = sphi %s2401_s24, %s3025_s24  }
   0x4   : > { %s2426_s30 = sadd.s32 1, %s2356_s27   ;;  %s179_s8 = sadd.s32 1, %s2352_s26 }
   0x5   : > { %s176_s9 = ssub.s32 %s2356_s27, %s2426_s30  ;;  %p189_p0 = scmp.ne.s32.totalorder %s2352_s26, %s2348_s25 }
   0x6   : > { %p177_p1 = scmp.eq.s32.totalorder %s176_s9, 0  ;;  %p190_p2 = scmp.eq.s32.totalorder %s2422_s28, 1 }
   0x7   : > { %p195_p3 = scmp.ne.s32.totalorder %s2348_s25, %s2344_s24  ;;  %p196_p4 = scmp.eq.s32.totalorder %s1700_s29, 1 }
   0x8   : > { %s2437_s10 = scalar_select %p177_p1, %s2352_s26, %s179_s8  }
   0x9   : > { %p2439_p5 = por %p190_p2, %p189_p0  ;;  %p2443_p6 = por %p196_p4, %p195_p3 }
   0xa   : > { %p1703_p7 = scmp.ge.s32.totalorder %s2356_s27, 1  ;;  %p249_p8 = scmp.lt.s32.totalorder %s2356_s27, 3 }
   0xc   : > { %p250_p9 = pnand %p1703_p7, %p249_p8 }
   0xd   : > { %v2149_v0 = vld [vmem:[%s3016_s1] sm:$0xff] (!%p250_p9)   ;;  %s2453_s15 = sshll.u32 (!%p250_p9), %s2422_s28, 5  ;;  %vm368_vm0 = vcmask (!%p250_p9), 130048   ;;  %v2151_v23 = vld [vmem:[%s3017_s2 + $0x8] sm:$0xff] (!%p250_p9)   ;;  %v2152_v28 = vld [vmem:[%s3017_s2 + $0x10] sm:$0xff] (!%p250_p9)   ;;  %s282_s20 = sand.u32 (!%p250_p9), 1, %s2348_s25  }
   0xe   : > { %253 = sbr.rel (%p250_p9) target bundleno = 1096 (0x448), region = 48  ;;  %p290_p10 = scmp.lt.s32.totalorder (!%p250_p9), %s2453_s15, 47  ;;  %1977 = vmatprep.subr.bf16.mxu0 (!%p250_p9), %v2149_v0  ;;  %2107 = vmatprep.subr.bf16.mxu1 (!%p250_p9), %v2149_v0  ;;  %v2150_v1 = vld [vmem:[%s3017_s2] sm:$0xff] (!%p250_p9)   ;;  %v2153_v37 = vld [vmem:[%s3017_s2 + $0x18] sm:$0xff] (!%p250_p9)   ;;  %v2155_v50 = vld [vmem:[%s3017_s2 + $0x28] sm:$0xff] (!%p250_p9)  }
   0xf   : > { %1978 = vmatpush3.bf16.msra.mxu0 (!%p250_p9), %v2149_v0  ;;  %2108 = vmatpush3.bf16.msra.mxu1 (!%p250_p9), %v2149_v0  ;;  %v2154_v45 = vld [vmem:[%s3017_s2 + $0x20] sm:$0xff] (!%p250_p9)   ;;  %v2156_v55 = vld [vmem:[%s3017_s2 + $0x30] sm:$0xff] (!%p250_p9)   ;;  %v2157_v56 = vld [vmem:[%s3017_s2 + $0x38] sm:$0xff] (!%p250_p9)   ;;  %s1704_s21 = sshll.u32 (!%p250_p9), %s282_s20, 7  ;;  %s2954_s29 = scalar_lea.sflag (!%p250_p9), [#allocation3], %s282_s20 }
  0x10   : > { %2011 = vmatprep.subr.bf16.mxu1 (!%p250_p9), %v2150_v1  ;;  %v2158_v57 = vld [vmem:[%s3018_s3] sm:$0xff] (!%p250_p9)   ;;  %v2159_v58 = vld [vmem:[%s3018_s3 + $0x8] sm:$0xff] (!%p250_p9)   ;;  %v2160_v59 = vld [vmem:[%s3018_s3 + $0x10] sm:$0xff] (!%p250_p9)   ;;  %s2904_s23 = scalar_lea.vmem (!%p250_p9), [#allocation2], %s1704_s21 }
  0x11   : > { %2059 = vmatprep.subr.bf16.mxu0 (!%p250_p9), %v2158_v57  ;;  %v2161_v60 = vld [vmem:[%s3018_s3 + $0x18] sm:$0xff] (!%p250_p9)   ;;  %v2162_v61 = vld [vmem:[%s3018_s3 + $0x20] sm:$0xff] (!%p250_p9)   ;;  %v2163_v62 = vld [vmem:[%s3018_s3 + $0x28] sm:$0xff] (!%p250_p9)  }
  0x12   : > { %v2555_v63 = vld [vmem:[%s3019_s4] ss:$0 sm:$0xff] (!%p250_p9) }
  0x15   : > { %s291_s18 = scalar_select %p290_p10, %s2453_s15, 47 }
  0x17   : > { %s1706_s19 = sshll.u32 %s291_s18, 3 }
  0x18   : > { %s2463_s22 = scalar_lea.vmem %s3015_s0, %s1706_s19 }
  0x19   : > { %v305_v2 = vld [vmem:[%s2463_s22] sm:$0xff]  ;;  %v306_v3 = vld [vmem:[%s2463_s22 + $0x8] sm:$0xff]  ;;  %v307_v4 = vld [vmem:[%s2463_s22 + $0x10] sm:$0xff] }
  0x1a   : > { %v337_v5 = vpack.c.bf16 %v306_v3, %v305_v2  ;;  %v308_v6 = vld [vmem:[%s2463_s22 + $0x18] sm:$0xff]  ;;  %v309_v7 = vld [vmem:[%s2463_s22 + $0x20] sm:$0xff]  ;;  %v310_v8 = vld [vmem:[%s2463_s22 + $0x28] sm:$0xff] }
  0x1b   : > { %v338_v9 = vpack.c.bf16 %v308_v6, %v307_v4  ;;  %v339_v10 = vpack.c.bf16 %v310_v8, %v309_v7  ;;  %v311_v11 = vld [vmem:[%s2463_s22 + $0x30] sm:$0xff]  ;;  %v312_v12 = vld [vmem:[%s2463_s22 + $0x38] sm:$0xff]  ;;  %v313_v13 = vld [vmem:[%s2463_s22 + $0x40] sm:$0xff] }
  0x1c   : > { %1979 = vmatprep.mubr.msk.bf16.mxu0 %vm368_vm0, %v337_v5  ;;  %v314_v14 = vld [vmem:[%s2463_s22 + $0x48] sm:$0xff]  ;;  %v321_v15 = vld [vmem:[%s2463_s22 + $0x80] sm:$0xff]  ;;  %v323_v18 = vld [vmem:[%s2463_s22 + $0x90] sm:$0xff]  ;;  %v340_v24 = vpack.c.bf16 %v312_v12, %v311_v11 }
  0x1d   : > { %1980 = vmatmul.mubr.msk.bf16.vlgmr.msra.gmra.mrb[0].mxu0 %vm368_vm0, %v338_v9  ;;  %v322_v16 = vld [vmem:[%s2463_s22 + $0x88] sm:$0xff]  ;;  %v324_v19 = vld [vmem:[%s2463_s22 + $0x98] sm:$0xff]  ;;  %v325_v20 = vld [vmem:[%s2463_s22 + $0xa0] sm:$0xff]  ;;  %v341_v26 = vpack.c.bf16 %v314_v14, %v313_v13 }
  0x1e   : > { %1983 = vmatprep.mubr.msk.bf16.mxu0 %vm368_vm0, %v339_v10  ;;  %v345_v17 = vpack.c.bf16 %v322_v16, %v321_v15  ;;  %v346_v21 = vpack.c.bf16 %v324_v19, %v323_v18  ;;  %v326_v22 = vld [vmem:[%s2463_s22 + $0xa8] sm:$0xff]  ;;  %v327_v27 = vld [vmem:[%s2463_s22 + $0xb0] sm:$0xff]  ;;  %v328_v29 = vld [vmem:[%s2463_s22 + $0xb8] sm:$0xff]  ;;  %2060 = vmatpush3.bf16.msra.mxu0 %v2158_v57 }
  0x1f   : > { %v347_v25 = vpack.c.bf16 %v326_v22, %v325_v20  ;;  %v329_v30 = vld [vmem:[%s2463_s22 + $0xc0] sm:$0xff]  ;;  %v330_v31 = vld [vmem:[%s2463_s22 + $0xc8] sm:$0xff]  ;;  %v315_v32 = vld [vmem:[%s2463_s22 + $0x50] sm:$0xff]  ;;  %v348_v36 = vpack.c.bf16 %v328_v29, %v327_v27  ;;  %2061 = vmatprep.subr.bf16.mxu0 %v2159_v58 }
  0x20   : > { %1995 = vmatprep.mubr.msk.bf16.mxu1 %vm368_vm0, %v345_v17  ;;  %v316_v33 = vld [vmem:[%s2463_s22 + $0x58] sm:$0xff]  ;;  %v317_v34 = vld [vmem:[%s2463_s22 + $0x60] sm:$0xff]  ;;  %v318_v35 = vld [vmem:[%s2463_s22 + $0x68] sm:$0xff]  ;;  %v349_v38 = vpack.c.bf16 %v330_v31, %v329_v30 }
  0x21   : > { %1996 = vmatmul.mubr.msk.bf16.vlgmr.msra.gmra.mrb[0].mxu1 %vm368_vm0, %v346_v21  ;;  %v342_v39 = vpack.c.bf16 %v316_v33, %v315_v32  ;;  %v343_v40 = vpack.c.bf16 %v318_v35, %v317_v34  ;;  %v331_v41 = vld [vmem:[%s2463_s22 + $0xd0] sm:$0xff]  ;;  %v332_v42 = vld [vmem:[%s2463_s22 + $0xd8] sm:$0xff]  ;;  %v333_v43 = vld [vmem:[%s2463_s22 + $0xe0] sm:$0xff] }
  0x22   : > { %1999 = vmatprep.mubr.msk.bf16.mxu1 %vm368_vm0, %v347_v25  ;;  %2012 = vmatpush3.bf16.msra.mxu1 %v2150_v1  ;;  %v334_v44 = vld [vmem:[%s2463_s22 + $0xe8] sm:$0xff]  ;;  %v319_v46 = vld [vmem:[%s2463_s22 + $0x70] sm:$0xff]  ;;  %v320_v47 = vld [vmem:[%s2463_s22 + $0x78] sm:$0xff]  ;;  %v350_v48 = vpack.c.bf16 %v332_v42, %v331_v41 }
  0x23   : > { %2013 = vmatprep.subr.bf16.mxu1 %v2151_v23  ;;  %v351_v49 = vpack.c.bf16 %v334_v44, %v333_v43  ;;  %v344_v51 = vpack.c.bf16 %v320_v47, %v319_v46  ;;  %v335_v52 = vld [vmem:[%s2463_s22 + $0xf0] sm:$0xff]  ;;  %v336_v53 = vld [vmem:[%s2463_s22 + $0xf8] sm:$0xff]  ;;  %2062 = vmatpush3.bf16.msra.mxu0 %v2159_v58  ;;  %s1627_s22 = ssub.s32 (%p2439_p5), 48, %s2453_s15 }
  0x24   : > { %v352_v54 = vpack.c.bf16 %v336_v53, %v335_v52  ;;  %2063 = vmatprep.subr.bf16.mxu0 %v2160_v59  ;;  %p1628_p11 = scmp.lt.s32.totalorder (%p2439_p5), %s1627_s22, 32 }
  0x25   : > { %1984 = vmatmul.mubr.msk.bf16.gmra.mrb[4].mxu0 %vm368_vm0, %v340_v24 }
  0x26   : > { %1987 = vmatprep.mubr.msk.bf16.mxu0 %vm368_vm0, %v341_v26  ;;  %2014 = vmatpush3.bf16.msra.mxu1 %v2151_v23 }
  0x27   : > { %2015 = vmatprep.subr.bf16.mxu1 %v2152_v28  ;;  %2064 = vmatpush3.bf16.msra.mxu0 %v2160_v59 }
  0x28   : > { %2065 = vmatprep.subr.bf16.mxu0 %v2161_v60 }
  0x29   : > { %2000 = vmatmul.mubr.msk.bf16.gmra.mrb[4].mxu1 %vm368_vm0, %v348_v36 }
  0x2a   : > { %2003 = vmatprep.mubr.msk.bf16.mxu1 %vm368_vm0, %v349_v38  ;;  %2016 = vmatpush3.bf16.msra.mxu1 %v2152_v28 }
  0x2b   : > { %2017 = vmatprep.subr.bf16.mxu1 %v2153_v37  ;;  %2066 = vmatpush3.bf16.msra.mxu0 %v2161_v60 }
  0x2c   : > { %2067 = vmatprep.subr.bf16.mxu0 %v2162_v61 }
  0x2d   : > { %1988 = vmatmul.mubr.msk.bf16.gmra.mrb[8].mxu0 %vm368_vm0, %v342_v39 }
  0x2e   : > { %1991 = vmatprep.mubr.msk.bf16.mxu0 %vm368_vm0, %v343_v40  ;;  %2018 = vmatpush3.bf16.msra.mxu1 %v2153_v37 }
  0x2f   : > { %2019 = vmatprep.subr.bf16.mxu1 %v2154_v45  ;;  %2068 = vmatpush3.bf16.msra.mxu0 %v2162_v61 }
  0x30   : > { %2069 = vmatprep.subr.bf16.mxu0 %v2163_v62 }
  0x31   : > { %2004 = vmatmul.mubr.msk.bf16.gmra.mrb[8].mxu1 %vm368_vm0, %v350_v48 }
  0x32   : > { %2007 = vmatprep.mubr.msk.bf16.mxu1 %vm368_vm0, %v351_v49  ;;  %2020 = vmatpush3.bf16.msra.mxu1 %v2154_v45 }
  0x33   : > { %2021 = vmatprep.subr.bf16.mxu1 %v2155_v50  ;;  %2070 = vmatpush3.bf16.msra.mxu0 %v2163_v62 }
  0x35   : > { %1992 = vmatmul.mubr.msk.bf16.gmra.mrb[12].mxu0 %vm368_vm0, %v344_v51 }
  0x36   : > { %2022 = vmatpush3.bf16.msra.mxu1 %v2155_v50 }
  0x37   : > { %2023 = vmatprep.subr.bf16.mxu1 %v2156_v55 }
  0x39   : > { %2008 = vmatmul.mubr.msk.bf16.gmra.mrb[12].mxu1 %vm368_vm0, %v352_v54 }
  0x3a   : > { %2024 = vmatpush3.bf16.msra.mxu1 %v2156_v55 }
  0x3b   : > { %2025 = vmatprep.subr.bf16.mxu1 %v2157_v56 }
  0x3e   : > { %2026 = vmatpush3.bf16.msra.mxu1 %v2157_v56 }
  0xf0   : > { %v1981_v0 = vpop.f32.mrb[0].mxu0 }
  0xf1   : > { %v460_v1 = vadd.f32 %v1981_v0, %v2555_v63  ;;  %v451_v2 = vpop.f32.mrb[1].mxu0 }
  0xf2   : > { %v452_v3 = vadd.f32 %v2555_v63, %v451_v2  ;;  %v1982_v4 = vpop.f32.mrb[2].mxu0 }
  0xf3   : > { %v463_v5 = vadd.f32 %v1982_v4, %v2555_v63  ;;  %v454_v6 = vpop.f32.mrb[3].mxu0  ;;  %v580_v8 = vmax.f32 %v460_v1, 0.0 }
  0xf4   : > { %v455_v7 = vadd.f32 %v2555_v63, %v454_v6  ;;  %v1997_v10 = vpop.f32.mrb[0].mxu1  ;;  %v578_v11 = vmax.f32 %v452_v3, 0.0 }
  0xf5   : > { %v581_v9 = vmax.f32 %v463_v5, 0.0  ;;  %v524_v13 = vadd.f32 %v1997_v10, %v2555_v63  ;;  %v515_v14 = vpop.f32.mrb[1].mxu1 }
  0xf6   : > { %v579_v12 = vmax.f32 %v455_v7, 0.0  ;;  %v516_v16 = vadd.f32 %v2555_v63, %v515_v14  ;;  %v1998_v17 = vpop.f32.mrb[2].mxu1 }
  0xf7   : > { %v611_v15 = vpack.c.bf16 %v581_v9, %v580_v8  ;;  %v596_v20 = vmax.f32 %v524_v13, 0.0  ;;  %v527_v21 = vadd.f32 %v1998_v17, %v2555_v63  ;;  %v518_v22 = vpop.f32.mrb[3].mxu1 }
  0xf8   : > { %v610_v18 = vpack.c.bf16 %v579_v12, %v578_v11  ;;  %v1985_v19 = vpop.f32.mrb[4].mxu0  ;;  %v594_v25 = vmax.f32 %v516_v16, 0.0  ;;  %v519_v26 = vadd.f32 %v2555_v63, %v518_v22 }
  0xf9   : > { %v476_v23 = vadd.f32 %v1985_v19, %v2555_v63  ;;  %v467_v24 = vpop.f32.mrb[5].mxu0  ;;  %v597_v29 = vmax.f32 %v527_v21, 0.0 }
  0xfa   : > { %v468_v27 = vadd.f32 %v2555_v63, %v467_v24  ;;  %v1986_v28 = vpop.f32.mrb[6].mxu0  ;;  %2027 = vmatprep.mubr.bf16.mxu1 %v610_v18  ;;  %v595_v33 = vmax.f32 %v519_v26, 0.0 }
  0xfb   : > { %v584_v30 = vmax.f32 %v476_v23, 0.0  ;;  %v479_v31 = vadd.f32 %v1986_v28, %v2555_v63  ;;  %v470_v32 = vpop.f32.mrb[7].mxu0  ;;  %2028 = vmatmul.mubr.bf16.vlgmr.msra.gmra.mrb[16].mxu1 %v611_v15  ;;  %v2569_v35 = vpack.c.bf16 %v597_v29, %v596_v20 }
  0xfc   : > { %v471_v34 = vadd.f32 %v2555_v63, %v470_v32  ;;  %v2571_v37 = vpack.c.bf16 %v595_v33, %v594_v25  ;;  %v2001_v38 = vpop.f32.mrb[4].mxu1  ;;  %v582_v39 = vmax.f32 %v468_v27, 0.0 }
  0xfd   : > { %v585_v36 = vmax.f32 %v479_v31, 0.0  ;;  %v540_v41 = vadd.f32 %v2001_v38, %v2555_v63  ;;  %v531_v42 = vpop.f32.mrb[5].mxu1 }
  0xfe   : > { %v583_v40 = vmax.f32 %v471_v34, 0.0  ;;  %v532_v44 = vadd.f32 %v2555_v63, %v531_v42  ;;  %v2002_v45 = vpop.f32.mrb[6].mxu1 }
  0xff   : > { %v613_v43 = vpack.c.bf16 %v585_v36, %v584_v30  ;;  %v600_v48 = vmax.f32 %v540_v41, 0.0  ;;  %v543_v49 = vadd.f32 %v2002_v45, %v2555_v63  ;;  %v534_v50 = vpop.f32.mrb[7].mxu1 }
 0x100   : > { %v612_v46 = vpack.c.bf16 %v583_v40, %v582_v39  ;;  %v1989_v47 = vpop.f32.mrb[8].mxu0  ;;  %v598_v53 = vmax.f32 %v532_v44, 0.0  ;;  %v535_v54 = vadd.f32 %v2555_v63, %v534_v50 }
 0x101   : > { %v492_v51 = vadd.f32 %v1989_v47, %v2555_v63  ;;  %v483_v52 = vpop.f32.mrb[9].mxu0  ;;  %v601_v57 = vmax.f32 %v543_v49, 0.0 }
 0x102   : > { %v484_v55 = vadd.f32 %v2555_v63, %v483_v52  ;;  %v1990_v56 = vpop.f32.mrb[10].mxu0  ;;  %2031 = vmatprep.mubr.bf16.mxu1 %v612_v46  ;;  %v599_v61 = vmax.f32 %v535_v54, 0.0 }
 0x103   : > { %v588_v58 = vmax.f32 %v492_v51, 0.0  ;;  %v495_v59 = vadd.f32 %v1990_v56, %v2555_v63  ;;  %v486_v60 = vpop.f32.mrb[11].mxu0  ;;  %2032 = vmatmul.mubr.bf16.gmra.mrb[20].mxu1 %v613_v43  ;;  %v621_v0 = vpack.c.bf16 %v601_v57, %v600_v48 }
 0x104   : > { %v487_v62 = vadd.f32 %v2555_v63, %v486_v60  ;;  %v620_v2 = vpack.c.bf16 %v599_v61, %v598_v53  ;;  %v2005_v3 = vpop.f32.mrb[8].mxu1  ;;  %v586_v4 = vmax.f32 %v484_v55, 0.0 }
 0x105   : > { %v589_v1 = vmax.f32 %v495_v59, 0.0  ;;  %v556_v6 = vadd.f32 %v2005_v3, %v2555_v63  ;;  %v547_v7 = vpop.f32.mrb[9].mxu1 }
 0x106   : > { %v587_v5 = vmax.f32 %v487_v62, 0.0  ;;  %v548_v9 = vadd.f32 %v2555_v63, %v547_v7  ;;  %v2006_v10 = vpop.f32.mrb[10].mxu1 }
 0x107   : > { %v615_v8 = vpack.c.bf16 %v589_v1, %v588_v58  ;;  %v604_v13 = vmax.f32 %v556_v6, 0.0  ;;  %v559_v14 = vadd.f32 %v2006_v10, %v2555_v63  ;;  %v550_v15 = vpop.f32.mrb[11].mxu1 }
 0x108   : > { %v614_v11 = vpack.c.bf16 %v587_v5, %v586_v4  ;;  %v1993_v12 = vpop.f32.mrb[12].mxu0  ;;  %v602_v18 = vmax.f32 %v548_v9, 0.0  ;;  %v551_v19 = vadd.f32 %v2555_v63, %v550_v15 }
 0x109   : > { %v508_v16 = vadd.f32 %v1993_v12, %v2555_v63  ;;  %v499_v17 = vpop.f32.mrb[13].mxu0  ;;  %v605_v22 = vmax.f32 %v559_v14, 0.0 }
 0x10a   : > { %v500_v20 = vadd.f32 %v2555_v63, %v499_v17  ;;  %v1994_v21 = vpop.f32.mrb[14].mxu0  ;;  %2035 = vmatprep.mubr.bf16.mxu1 %v614_v11  ;;  %v603_v26 = vmax.f32 %v551_v19, 0.0 }
 0x10b   : > { %v592_v23 = vmax.f32 %v508_v16, 0.0  ;;  %v511_v24 = vadd.f32 %v1994_v21, %v2555_v63  ;;  %v502_v25 = vpop.f32.mrb[15].mxu0  ;;  %2036 = vmatmul.mubr.bf16.gmra.mrb[24].mxu1 %v615_v8  ;;  %v623_v28 = vpack.c.bf16 %v605_v22, %v604_v13 }
 0x10c   : > { %v503_v27 = vadd.f32 %v2555_v63, %v502_v25  ;;  %v622_v30 = vpack.c.bf16 %v603_v26, %v602_v18  ;;  %v2009_v31 = vpop.f32.mrb[12].mxu1  ;;  %v590_v32 = vmax.f32 %v500_v20, 0.0 }
 0x10d   : > { %v593_v29 = vmax.f32 %v511_v24, 0.0  ;;  %v572_v34 = vadd.f32 %v2009_v31, %v2555_v63  ;;  %v563_v36 = vpop.f32.mrb[13].mxu1 }
 0x10e   : > { %v591_v33 = vmax.f32 %v503_v27, 0.0  ;;  %v564_v39 = vadd.f32 %v2555_v63, %v563_v36  ;;  %v2010_v40 = vpop.f32.mrb[14].mxu1 }
 0x10f   : > { %v617_v38 = vpack.c.bf16 %v593_v29, %v592_v23  ;;  %v608_v42 = vmax.f32 %v572_v34, 0.0  ;;  %v575_v43 = vadd.f32 %v2010_v40, %v2555_v63  ;;  %v566_v44 = vpop.f32.mrb[15].mxu1 }
 0x110   : > { %v616_v41 = vpack.c.bf16 %v591_v33, %v590_v32  ;;  %v606_v45 = vmax.f32 %v564_v39, 0.0  ;;  %v567_v46 = vadd.f32 %v2555_v63, %v566_v44  ;;  %v2164_v63 = vld [vmem:[%s3018_s3 + $0x30] sm:$0xff]  }
 0x111   : > { %v609_v47 = vmax.f32 %v575_v43, 0.0  ;;  %2071 = vmatprep.subr.bf16.mxu0 %v2164_v63 }
 0x112   : > { %2039 = vmatprep.mubr.bf16.mxu1 %v616_v41  ;;  %v607_v48 = vmax.f32 %v567_v46, 0.0  ;;  %2072 = vmatpush3.bf16.msra.mxu0 %v2164_v63 }
 0x113   : > { %2040 = vmatmul.mubr.bf16.gmra.mrb[28].mxu1 %v617_v38  ;;  %v625_v49 = vpack.c.bf16 %v609_v47, %v608_v42 }
 0x114   : > { %2043 = vmatprep.mubr.bf16.mxu1 %v2571_v37  ;;  %v624_v50 = vpack.c.bf16 %v607_v48, %v606_v45  ;;  %v2165_v37 = vld [vmem:[%s3018_s3 + $0x38] sm:$0xff]  }
 0x115   : > { %2073 = vmatprep.subr.bf16.mxu0 %v2165_v37 }
 0x116   : > { %2074 = vmatpush3.bf16.msra.mxu0 %v2165_v37 }
 0x11b   : > { %2044 = vmatmul.mubr.bf16.gmra.mrb[32].mxu1 %v2569_v35  ;;  %v2604_v35 = vld [vmem:[%s3020_s5] ss:$0 sm:$0xff] }
 0x11c   : > { %2047 = vmatprep.mubr.bf16.mxu1 %v620_v2 }
 0x123   : > { %2048 = vmatmul.mubr.bf16.gmra.mrb[36].mxu1 %v621_v0 }
 0x124   : > { %2051 = vmatprep.mubr.bf16.mxu1 %v622_v30 }
 0x12b   : > { %2052 = vmatmul.mubr.bf16.gmra.mrb[40].mxu1 %v623_v28 }
 0x12c   : > { %2055 = vmatprep.mubr.bf16.mxu1 %v624_v50 }
 0x133   : > { %2056 = vmatmul.mubr.bf16.gmra.mrb[44].mxu1 %v625_v49 }
 0x1ce   : > { %v2029_v51 = vpop.f32.mrb[16].mxu1 }
 0x1cf   : > { %v740_v52 = vadd.f32 %v2029_v51, %v2604_v35  ;;  %v731_v53 = vpop.f32.mrb[17].mxu1 }
 0x1d0   : > { %v732_v54 = vadd.f32 %v2604_v35, %v731_v53  ;;  %v2030_v55 = vpop.f32.mrb[18].mxu1 }
 0x1d1   : > { %v743_v56 = vadd.f32 %v2030_v55, %v2604_v35  ;;  %v734_v57 = vpop.f32.mrb[19].mxu1  ;;  %v860_v59 = vmax.f32 %v740_v52, 0.0 }
 0x1d2   : > { %v735_v58 = vadd.f32 %v2604_v35, %v734_v57  ;;  %v858_v61 = vmax.f32 %v732_v54, 0.0 }
 0x1d3   : > { %v861_v60 = vmax.f32 %v743_v56, 0.0 }
 0x1d4   : > { %v859_v62 = vmax.f32 %v735_v58, 0.0 }
 0x1d5   : > { %v891_v0 = vpack.c.bf16 %v861_v60, %v860_v59 }
 0x1d6   : > { %v890_v1 = vpack.c.bf16 %v859_v62, %v858_v61  ;;  %v2033_v2 = vpop.f32.mrb[20].mxu1 }
 0x1d7   : > { %v756_v3 = vadd.f32 %v2033_v2, %v2604_v35  ;;  %v747_v4 = vpop.f32.mrb[21].mxu1 }
 0x1d8   : > { %v748_v5 = vadd.f32 %v2604_v35, %v747_v4  ;;  %v2034_v6 = vpop.f32.mrb[22].mxu1  ;;  %2075 = vmatprep.mubr.bf16.mxu0 %v890_v1 }
 0x1d9   : > { %v759_v7 = vadd.f32 %v2034_v6, %v2604_v35  ;;  %v750_v8 = vpop.f32.mrb[23].mxu1  ;;  %2076 = vmatmul.mubr.bf16.vlgmr.msra.gmra.mrb[16].mxu0 %v891_v0  ;;  %v864_v10 = vmax.f32 %v756_v3, 0.0 }
 0x1da   : > { %v751_v9 = vadd.f32 %v2604_v35, %v750_v8  ;;  %v862_v12 = vmax.f32 %v748_v5, 0.0 }
 0x1db   : > { %v865_v11 = vmax.f32 %v759_v7, 0.0 }
 0x1dc   : > { %v863_v13 = vmax.f32 %v751_v9, 0.0 }
 0x1dd   : > { %v893_v14 = vpack.c.bf16 %v865_v11, %v864_v10 }
 0x1de   : > { %v892_v15 = vpack.c.bf16 %v863_v13, %v862_v12  ;;  %v2037_v16 = vpop.f32.mrb[24].mxu1 }
 0x1df   : > { %v772_v17 = vadd.f32 %v2037_v16, %v2604_v35  ;;  %v763_v18 = vpop.f32.mrb[25].mxu1 }
 0x1e0   : > { %v764_v19 = vadd.f32 %v2604_v35, %v763_v18  ;;  %v2038_v20 = vpop.f32.mrb[26].mxu1  ;;  %2079 = vmatprep.mubr.bf16.mxu0 %v892_v15 }
 0x1e1   : > { %v775_v21 = vadd.f32 %v2038_v20, %v2604_v35  ;;  %v766_v22 = vpop.f32.mrb[27].mxu1  ;;  %2080 = vmatmul.mubr.bf16.gmra.mrb[20].mxu0 %v893_v14  ;;  %v868_v24 = vmax.f32 %v772_v17, 0.0 }
 0x1e2   : > { %v767_v23 = vadd.f32 %v2604_v35, %v766_v22  ;;  %v866_v26 = vmax.f32 %v764_v19, 0.0 }
 0x1e3   : > { %v869_v25 = vmax.f32 %v775_v21, 0.0 }
 0x1e4   : > { %v867_v27 = vmax.f32 %v767_v23, 0.0 }
 0x1e5   : > { %v895_v28 = vpack.c.bf16 %v869_v25, %v868_v24 }
 0x1e6   : > { %v894_v29 = vpack.c.bf16 %v867_v27, %v866_v26  ;;  %v2041_v30 = vpop.f32.mrb[28].mxu1 }
 0x1e7   : > { %v788_v31 = vadd.f32 %v2041_v30, %v2604_v35  ;;  %v779_v32 = vpop.f32.mrb[29].mxu1 }
 0x1e8   : > { %v780_v33 = vadd.f32 %v2604_v35, %v779_v32  ;;  %v2042_v34 = vpop.f32.mrb[30].mxu1  ;;  %2083 = vmatprep.mubr.bf16.mxu0 %v894_v29 }
 0x1e9   : > { %v791_v36 = vadd.f32 %v2042_v34, %v2604_v35  ;;  %v782_v38 = vpop.f32.mrb[31].mxu1  ;;  %2084 = vmatmul.mubr.bf16.gmra.mrb[24].mxu0 %v895_v28  ;;  %v872_v40 = vmax.f32 %v788_v31, 0.0 }
 0x1ea   : > { %v783_v39 = vadd.f32 %v2604_v35, %v782_v38  ;;  %v870_v42 = vmax.f32 %v780_v33, 0.0 }
 0x1eb   : > { %v873_v41 = vmax.f32 %v791_v36, 0.0 }
 0x1ec   : > { %v871_v43 = vmax.f32 %v783_v39, 0.0  ;;  %v2641_v39 = vld [vmem:[%s3021_s6] ss:$0 sm:$0xff] }
 0x1ed   : > { %v897_v44 = vpack.c.bf16 %v873_v41, %v872_v40 }
 0x1ee   : > { %v896_v45 = vpack.c.bf16 %v871_v43, %v870_v42  ;;  %v2045_v46 = vpop.f32.mrb[32].mxu1 }
 0x1ef   : > { %v804_v47 = vadd.f32 %v2045_v46, %v2604_v35  ;;  %v795_v48 = vpop.f32.mrb[33].mxu1 }
 0x1f0   : > { %v796_v49 = vadd.f32 %v2604_v35, %v795_v48  ;;  %v2046_v50 = vpop.f32.mrb[34].mxu1  ;;  %2087 = vmatprep.mubr.bf16.mxu0 %v896_v45 }
 0x1f1   : > { %v807_v63 = vadd.f32 %v2046_v50, %v2604_v35  ;;  %v798_v37 = vpop.f32.mrb[35].mxu1  ;;  %2088 = vmatmul.mubr.bf16.gmra.mrb[28].mxu0 %v897_v44  ;;  %v876_v52 = vmax.f32 %v804_v47, 0.0 }
 0x1f2   : > { %v799_v51 = vadd.f32 %v2604_v35, %v798_v37  ;;  %v874_v54 = vmax.f32 %v796_v49, 0.0 }
 0x1f3   : > { %v877_v53 = vmax.f32 %v807_v63, 0.0 }
 0x1f4   : > { %v875_v55 = vmax.f32 %v799_v51, 0.0 }
 0x1f5   : > { %v899_v56 = vpack.c.bf16 %v877_v53, %v876_v52 }
 0x1f6   : > { %v898_v57 = vpack.c.bf16 %v875_v55, %v874_v54  ;;  %v2049_v58 = vpop.f32.mrb[36].mxu1 }
 0x1f7   : > { %v820_v59 = vadd.f32 %v2049_v58, %v2604_v35  ;;  %v811_v60 = vpop.f32.mrb[37].mxu1 }
 0x1f8   : > { %v812_v61 = vadd.f32 %v2604_v35, %v811_v60  ;;  %v2050_v62 = vpop.f32.mrb[38].mxu1  ;;  %2091 = vmatprep.mubr.bf16.mxu0 %v898_v57 }
 0x1f9   : > { %v823_v0 = vadd.f32 %v2050_v62, %v2604_v35  ;;  %v814_v1 = vpop.f32.mrb[39].mxu1  ;;  %2092 = vmatmul.mubr.bf16.gmra.mrb[32].mxu0 %v899_v56  ;;  %v880_v3 = vmax.f32 %v820_v59, 0.0 }
 0x1fa   : > { %v815_v2 = vadd.f32 %v2604_v35, %v814_v1  ;;  %v878_v5 = vmax.f32 %v812_v61, 0.0 }
 0x1fb   : > { %v881_v4 = vmax.f32 %v823_v0, 0.0 }
 0x1fc   : > { %v879_v6 = vmax.f32 %v815_v2, 0.0 }
 0x1fd   : > { %v901_v7 = vpack.c.bf16 %v881_v4, %v880_v3 }
 0x1fe   : > { %v900_v8 = vpack.c.bf16 %v879_v6, %v878_v5  ;;  %v2053_v9 = vpop.f32.mrb[40].mxu1 }
 0x1ff   : > { %v836_v10 = vadd.f32 %v2053_v9, %v2604_v35  ;;  %v827_v11 = vpop.f32.mrb[41].mxu1 }
 0x200   : > { %v828_v12 = vadd.f32 %v2604_v35, %v827_v11  ;;  %v2054_v13 = vpop.f32.mrb[42].mxu1  ;;  %2095 = vmatprep.mubr.bf16.mxu0 %v900_v8 }
 0x201   : > { %v839_v14 = vadd.f32 %v2054_v13, %v2604_v35  ;;  %v830_v15 = vpop.f32.mrb[43].mxu1  ;;  %2096 = vmatmul.mubr.bf16.gmra.mrb[36].mxu0 %v901_v7  ;;  %v884_v17 = vmax.f32 %v836_v10, 0.0 }
 0x202   : > { %v831_v16 = vadd.f32 %v2604_v35, %v830_v15  ;;  %v882_v19 = vmax.f32 %v828_v12, 0.0 }
 0x203   : > { %v885_v18 = vmax.f32 %v839_v14, 0.0 }
 0x204   : > { %v883_v20 = vmax.f32 %v831_v16, 0.0 }
 0x205   : > { %v903_v21 = vpack.c.bf16 %v885_v18, %v884_v17 }
 0x206   : > { %v902_v22 = vpack.c.bf16 %v883_v20, %v882_v19  ;;  %v2057_v23 = vpop.f32.mrb[44].mxu1 }
 0x207   : > { %v852_v24 = vadd.f32 %v2057_v23, %v2604_v35  ;;  %v843_v25 = vpop.f32.mrb[45].mxu1 }
 0x208   : > { %v844_v26 = vadd.f32 %v2604_v35, %v843_v25  ;;  %v2058_v27 = vpop.f32.mrb[46].mxu1  ;;  %2099 = vmatprep.mubr.bf16.mxu0 %v902_v22 }
 0x209   : > { %v855_v28 = vadd.f32 %v2058_v27, %v2604_v35  ;;  %v846_v29 = vpop.f32.mrb[47].mxu1  ;;  %2100 = vmatmul.mubr.bf16.gmra.mrb[40].mxu0 %v903_v21  ;;  %v888_v31 = vmax.f32 %v852_v24, 0.0 }
 0x20a   : > { %v847_v30 = vadd.f32 %v2604_v35, %v846_v29  ;;  %v886_v33 = vmax.f32 %v844_v26, 0.0 }
 0x20b   : > { %v889_v32 = vmax.f32 %v855_v28, 0.0 }
 0x20c   : > { %v887_v34 = vmax.f32 %v847_v30, 0.0 }
 0x20d   : > { %v905_v36 = vpack.c.bf16 %v889_v32, %v888_v31 }
 0x20e   : > { %v904_v38 = vpack.c.bf16 %v887_v34, %v886_v33 }
 0x210   : > { %2103 = vmatprep.mubr.bf16.mxu0 %v904_v38 }
 0x211   : > { %2104 = vmatmul.mubr.bf16.gmra.mrb[44].mxu0 %v905_v36 }
 0x2ac   : > { %v2077_v40 = vpop.f32.mrb[16].mxu0 }
 0x2ad   : > { %v2644_v41 = vadd.f32 %v2077_v40, %v2641_v39  ;;  %v1011_v42 = vpop.f32.mrb[17].mxu0 }
 0x2ae   : > { %v2647_v35 = vadd.f32 %v2641_v39, %v1011_v42  ;;  %v2078_v43 = vpop.f32.mrb[18].mxu0 }
 0x2af   : > { %1142 = vmax.xlane.f32.xlu1 %v2644_v41  ;;  %v1014_v44 = vpop.f32.mrb[19].mxu0  ;;  %v2652_v45 = vadd.f32 %v2078_v43, %v2641_v39 }
 0x2b0   : > { %1138 = vmax.xlane.f32.xlu0 %v2647_v35  ;;  %v2655_v46 = vadd.f32 %v2641_v39, %v1014_v44 }
 0x2b3   : > { %1144 = vmax.xlane.f32.xlu1 %v2652_v45 }
 0x2b4   : > { %v2081_v47 = vpop.f32.mrb[20].mxu0  ;;  %1140 = vmax.xlane.f32.xlu0 %v2655_v46 }
 0x2b5   : > { %v2660_v48 = vadd.f32 %v2081_v47, %v2641_v39  ;;  %v1027_v49 = vpop.f32.mrb[21].mxu0 }
 0x2b6   : > { %v2082_v50 = vpop.f32.mrb[22].mxu0  ;;  %v2668_v51 = vadd.f32 %v2641_v39, %v1027_v49 }
 0x2b7   : > { %v2663_v63 = vadd.f32 %v2082_v50, %v2641_v39  ;;  %v1030_v37 = vpop.f32.mrb[23].mxu0 }
 0x2b8   : > { %1150 = vmax.xlane.f32.xlu0 %v2660_v48  ;;  %v2671_v52 = vadd.f32 %v2641_v39, %v1030_v37 }
 0x2b9   : > { %1152 = vmax.xlane.f32.xlu1 %v2663_v63 }
 0x2bc   : > { %v2085_v53 = vpop.f32.mrb[24].mxu0  ;;  %1146 = vmax.xlane.f32.xlu0 %v2668_v51 }
 0x2bd   : > { %v2675_v54 = vadd.f32 %v2085_v53, %v2641_v39  ;;  %v1043_v55 = vpop.f32.mrb[25].mxu0  ;;  %1148 = vmax.xlane.f32.xlu1 %v2671_v52 }
 0x2be   : > { %v2086_v56 = vpop.f32.mrb[26].mxu0  ;;  %v2684_v59 = vadd.f32 %v2641_v39, %v1043_v55 }
 0x2bf   : > { %v2679_v57 = vadd.f32 %v2086_v56, %v2641_v39  ;;  %v1046_v58 = vpop.f32.mrb[27].mxu0 }
 0x2c0   : > { %1158 = vmax.xlane.f32.xlu0 %v2675_v54  ;;  %v2687_v60 = vadd.f32 %v2641_v39, %v1046_v58 }
 0x2c1   : > { %1160 = vmax.xlane.f32.xlu1 %v2679_v57 }
 0x2c4   : > { %v2089_v61 = vpop.f32.mrb[28].mxu0  ;;  %1154 = vmax.xlane.f32.xlu0 %v2684_v59 }
 0x2c5   : > { %v2691_v62 = vadd.f32 %v2089_v61, %v2641_v39  ;;  %v1059_v0 = vpop.f32.mrb[29].mxu0  ;;  %1156 = vmax.xlane.f32.xlu1 %v2687_v60 }
 0x2c6   : > { %v2090_v1 = vpop.f32.mrb[30].mxu0  ;;  %v2700_v4 = vadd.f32 %v2641_v39, %v1059_v0 }
 0x2c7   : > { %v2695_v2 = vadd.f32 %v2090_v1, %v2641_v39  ;;  %v1062_v3 = vpop.f32.mrb[31].mxu0 }
 0x2c8   : > { %1166 = vmax.xlane.f32.xlu0 %v2691_v62  ;;  %v2703_v5 = vadd.f32 %v2641_v39, %v1062_v3 }
 0x2c9   : > { %1168 = vmax.xlane.f32.xlu1 %v2695_v2 }
 0x2cc   : > { %v2093_v6 = vpop.f32.mrb[32].mxu0  ;;  %1162 = vmax.xlane.f32.xlu0 %v2700_v4 }
 0x2cd   : > { %v2707_v7 = vadd.f32 %v2093_v6, %v2641_v39  ;;  %v1075_v8 = vpop.f32.mrb[33].mxu0  ;;  %1164 = vmax.xlane.f32.xlu1 %v2703_v5 }
 0x2ce   : > { %v2094_v9 = vpop.f32.mrb[34].mxu0  ;;  %v2716_v12 = vadd.f32 %v2641_v39, %v1075_v8 }
 0x2cf   : > { %v2711_v10 = vadd.f32 %v2094_v9, %v2641_v39  ;;  %v1078_v11 = vpop.f32.mrb[35].mxu0 }
 0x2d0   : > { %1174 = vmax.xlane.f32.xlu0 %v2707_v7  ;;  %v2719_v13 = vadd.f32 %v2641_v39, %v1078_v11 }
 0x2d1   : > { %1176 = vmax.xlane.f32.xlu1 %v2711_v10 }
 0x2d4   : > { %v2097_v14 = vpop.f32.mrb[36].mxu0  ;;  %1170 = vmax.xlane.f32.xlu0 %v2716_v12 }
 0x2d5   : > { %v2723_v15 = vadd.f32 %v2097_v14, %v2641_v39  ;;  %v1091_v16 = vpop.f32.mrb[37].mxu0  ;;  %1172 = vmax.xlane.f32.xlu1 %v2719_v13 }
 0x2d6   : > { %v2098_v17 = vpop.f32.mrb[38].mxu0  ;;  %v2732_v20 = vadd.f32 %v2641_v39, %v1091_v16 }
 0x2d7   : > { %v2727_v18 = vadd.f32 %v2098_v17, %v2641_v39  ;;  %v1094_v19 = vpop.f32.mrb[39].mxu0 }
 0x2d8   : > { %1182 = vmax.xlane.f32.xlu0 %v2723_v15  ;;  %v2735_v21 = vadd.f32 %v2641_v39, %v1094_v19 }
 0x2d9   : > { %1184 = vmax.xlane.f32.xlu1 %v2727_v18 }
 0x2dc   : > { %v2101_v22 = vpop.f32.mrb[40].mxu0  ;;  %1178 = vmax.xlane.f32.xlu0 %v2732_v20 }
 0x2dd   : > { %v2739_v23 = vadd.f32 %v2101_v22, %v2641_v39  ;;  %v1107_v24 = vpop.f32.mrb[41].mxu0  ;;  %1180 = vmax.xlane.f32.xlu1 %v2735_v21 }
 0x2de   : > { %v2102_v25 = vpop.f32.mrb[42].mxu0  ;;  %v2748_v28 = vadd.f32 %v2641_v39, %v1107_v24 }
 0x2df   : > { %v2743_v26 = vadd.f32 %v2102_v25, %v2641_v39  ;;  %v1110_v27 = vpop.f32.mrb[43].mxu0 }
 0x2e0   : > { %1190 = vmax.xlane.f32.xlu0 %v2739_v23  ;;  %v2751_v29 = vadd.f32 %v2641_v39, %v1110_v27 }
 0x2e1   : > { %1192 = vmax.xlane.f32.xlu1 %v2743_v26 }
 0x2e4   : > { %v2105_v30 = vpop.f32.mrb[44].mxu0  ;;  %1186 = vmax.xlane.f32.xlu0 %v2748_v28 }
 0x2e5   : > { %v1123_v31 = vpop.f32.mrb[45].mxu0  ;;  %1188 = vmax.xlane.f32.xlu1 %v2751_v29  ;;  %v2763_v38 = vadd.f32 %v2105_v30, %v2641_v39 }
 0x2e6   : > { %v2756_v32 = vadd.f32 %v2641_v39, %v1123_v31  ;;  %v2106_v33 = vpop.f32.mrb[46].mxu0 }
 0x2e7   : > { %v1126_v34 = vpop.f32.mrb[47].mxu0  ;;  %v2767_v40 = vadd.f32 %v2106_v33, %v2641_v39 }
 0x2e8   : > { %v2759_v36 = vadd.f32 %v2641_v39, %v1126_v34  ;;  %1194 = vmax.xlane.f32.xlu0 %v2756_v32 }
 0x2ea   : > { %1196 = vmax.xlane.f32.xlu1 %v2759_v36 }
 0x2ec   : > { %1198 = vmax.xlane.f32.xlu0 %v2763_v38 }
 0x2ee   : > { %1200 = vmax.xlane.f32.xlu1 %v2767_v40 }
 0x33c   : > { %v1143_v42 = vpop.xlane.xlu1 %1142 }
 0x33d   : > { %v2772_v43 = vsub.f32 %v2644_v41, %v1143_v42  ;;  %v1139_v44 = vpop.xlane.xlu0 %1138 }
 0x33e   : > { %v2775_v47 = vsub.f32 %v2647_v35, %v1139_v44 }
 0x33f   : > { %v1238_v49 = vmul.f32 1.442695, %v2772_v43 }
 0x340   : > { %v1234_v50 = vmul.f32 1.442695, %v2775_v47  ;;  %v1145_v37 = vpop.xlane.xlu1 %1144 }
 0x341   : > { %2166 = vpow2.f32 %v1238_v49  ;;  %v2780_v39 = vsub.f32 %v2652_v45, %v1145_v37  ;;  %v1141_v53 = vpop.xlane.xlu0 %1140 }
 0x342   : > { %v2783_v55 = vsub.f32 %v2655_v46, %v1141_v53  ;;  %2168 = vpow2.f32 %v1234_v50 }
 0x343   : > { %v1240_v41 = vmul.f32 1.442695, %v2780_v39 }
 0x344   : > { %v1236_v35 = vmul.f32 1.442695, %v2783_v55 }
 0x345   : > { %2170 = vpow2.f32 %v1240_v41  ;;  %v1151_v56 = vpop.xlane.xlu0 %1150 }
 0x346   : > { %v2788_v58 = vsub.f32 %v2660_v48, %v1151_v56  ;;  %v1153_v61 = vpop.xlane.xlu1 %1152  ;;  %2172 = vpow2.f32 %v1236_v35 }
 0x347   : > { %v2791_v0 = vsub.f32 %v2663_v63, %v1153_v61 }
 0x348   : > { %v1246_v45 = vmul.f32 1.442695, %v2788_v58 }
 0x349   : > { %v1248_v46 = vmul.f32 1.442695, %v2791_v0  ;;  %v1147_v1 = vpop.xlane.xlu0 %1146 }
 0x34a   : > { %2174 = vpow2.f32 %v1246_v45  ;;  %v2796_v3 = vsub.f32 %v2668_v51, %v1147_v1  ;;  %v1149_v6 = vpop.xlane.xlu1 %1148 }
 0x34b   : > { %v2167_v8 = vpop.eup %2166  ;;  %v2799_v9 = vsub.f32 %v2671_v52, %v1149_v6  ;;  %2176 = vpow2.f32 %v1248_v46 }
 0x34c   : > { %v1242_v48 = vmul.f32 1.442695, %v2796_v3  ;;  %1302 = vadd.xlane.f32.xlu0 %v2167_v8  ;;  %v2169_v14 = vpop.eup %2168 }
 0x34d   : > { %v1244_v63 = vmul.f32 1.442695, %v2799_v9  ;;  %v1159_v11 = vpop.xlane.xlu0 %1158 }
 0x34e   : > { %2178 = vpow2.f32 %v1242_v48  ;;  %v2804_v16 = vsub.f32 %v2675_v54, %v1159_v11  ;;  %v1161_v17 = vpop.xlane.xlu1 %1160 }
 0x34f   : > { %v2171_v51 = vpop.eup %2170  ;;  %v2807_v19 = vsub.f32 %v2679_v57, %v1161_v17  ;;  %2180 = vpow2.f32 %v1244_v63 }
 0x350   : > { %v1254_v52 = vmul.f32 1.442695, %v2804_v16  ;;  %1304 = vadd.xlane.f32.xlu1 %v2171_v51  ;;  %1298 = vadd.xlane.f32.xlu0 %v2169_v14  ;;  %v2173_v54 = vpop.eup %2172 }
 0x351   : > { %v1256_v22 = vmul.f32 1.442695, %v2807_v19  ;;  %v1155_v24 = vpop.xlane.xlu0 %1154 }
 0x352   : > { %2182 = vpow2.f32 %v1254_v52  ;;  %v2812_v25 = vsub.f32 %v2684_v59, %v1155_v24  ;;  %v1157_v27 = vpop.xlane.xlu1 %1156 }
 0x353   : > { %v2815_v30 = vsub.f32 %v2687_v60, %v1157_v27  ;;  %2184 = vpow2.f32 %v1256_v22 }
 0x354   : > { %v2175_v31 = vpop.eup %2174  ;;  %v1250_v57 = vmul.f32 1.442695, %v2812_v25  ;;  %1300 = vadd.xlane.f32.xlu1 %v2173_v54 }
 0x355   : > { %v1252_v33 = vmul.f32 1.442695, %v2815_v30  ;;  %1310 = vadd.xlane.f32.xlu0 %v2175_v31  ;;  %v1167_v34 = vpop.xlane.xlu0 %1166  ;;  %v2177_v44 = vpop.eup %2176 }
 0x356   : > { %2186 = vpow2.f32 %v1250_v57  ;;  %v2820_v42 = vsub.f32 %v2691_v62, %v1167_v34  ;;  %v1169_v59 = vpop.xlane.xlu1 %1168 }
 0x357   : > { %v2823_v49 = vsub.f32 %v2695_v2, %v1169_v59  ;;  %2188 = vpow2.f32 %v1252_v33 }
 0x358   : > { %v2179_v60 = vpop.eup %2178  ;;  %v1262_v50 = vmul.f32 1.442695, %v2820_v42  ;;  %1312 = vadd.xlane.f32.xlu1 %v2177_v44 }
 0x359   : > { %v1264_v37 = vmul.f32 1.442695, %v2823_v49  ;;  %1306 = vadd.xlane.f32.xlu0 %v2179_v60  ;;  %v1163_v53 = vpop.xlane.xlu0 %1162  ;;  %v2181_v35 = vpop.eup %2180 }
 0x35a   : > { %2190 = vpow2.f32 %v1262_v50  ;;  %v2828_v41 = vsub.f32 %v2700_v4, %v1163_v53  ;;  %v1165_v62 = vpop.xlane.xlu1 %1164 }
 0x35b   : > { %v2831_v56 = vsub.f32 %v2703_v5, %v1165_v62  ;;  %2192 = vpow2.f32 %v1264_v37 }
 0x35c   : > { %v2183_v2 = vpop.eup %2182  ;;  %v1258_v61 = vmul.f32 1.442695, %v2828_v41  ;;  %1308 = vadd.xlane.f32.xlu1 %v2181_v35 }
 0x35d   : > { %v1260_v45 = vmul.f32 1.442695, %v2831_v56  ;;  %1318 = vadd.xlane.f32.xlu0 %v2183_v2  ;;  %v1175_v46 = vpop.xlane.xlu0 %1174  ;;  %v2185_v6 = vpop.eup %2184 }
 0x35e   : > { %2194 = vpow2.f32 %v1258_v61  ;;  %v2836_v1 = vsub.f32 %v2707_v7, %v1175_v46  ;;  %v1177_v4 = vpop.xlane.xlu1 %1176 }
 0x35f   : > { %v2839_v8 = vsub.f32 %v2711_v10, %v1177_v4  ;;  %2196 = vpow2.f32 %v1260_v45 }
 0x360   : > { %v2187_v5 = vpop.eup %2186  ;;  %v1270_v48 = vmul.f32 1.442695, %v2836_v1  ;;  %1320 = vadd.xlane.f32.xlu1 %v2185_v6 }
 0x361   : > { %v1272_v63 = vmul.f32 1.442695, %v2839_v8  ;;  %1314 = vadd.xlane.f32.xlu0 %v2187_v5  ;;  %v1171_v11 = vpop.xlane.xlu0 %1170  ;;  %v2189_v17 = vpop.eup %2188 }
 0x362   : > { %2198 = vpow2.f32 %v1270_v48  ;;  %v2844_v14 = vsub.f32 %v2716_v12, %v1171_v11  ;;  %v1173_v7 = vpop.xlane.xlu1 %1172 }
 0x363   : > { %v2847_v51 = vsub.f32 %v2719_v13, %v1173_v7  ;;  %2200 = vpow2.f32 %v1272_v63 }
 0x364   : > { %v2191_v10 = vpop.eup %2190  ;;  %v1266_v52 = vmul.f32 1.442695, %v2844_v14  ;;  %1316 = vadd.xlane.f32.xlu1 %v2189_v17 }
 0x365   : > { %v1268_v22 = vmul.f32 1.442695, %v2847_v51  ;;  %1326 = vadd.xlane.f32.xlu0 %v2191_v10  ;;  %v1183_v24 = vpop.xlane.xlu0 %1182  ;;  %v2193_v54 = vpop.eup %2192 }
 0x366   : > { %2202 = vpow2.f32 %v1266_v52  ;;  %v2852_v27 = vsub.f32 %v2723_v15, %v1183_v24  ;;  %v1185_v12 = vpop.xlane.xlu1 %1184 }
 0x367   : > { %v2855_v31 = vsub.f32 %v2727_v18, %v1185_v12  ;;  %2204 = vpow2.f32 %v1268_v22 }
 0x368   : > { %v2195_v13 = vpop.eup %2194  ;;  %v1278_v57 = vmul.f32 1.442695, %v2852_v27  ;;  %1328 = vadd.xlane.f32.xlu1 %v2193_v54 }
 0x369   : > { %v1280_v33 = vmul.f32 1.442695, %v2855_v31  ;;  %1322 = vadd.xlane.f32.xlu0 %v2195_v13  ;;  %v1179_v34 = vpop.xlane.xlu0 %1178  ;;  %v2197_v44 = vpop.eup %2196 }
 0x36a   : > { %2206 = vpow2.f32 %v1278_v57  ;;  %v2860_v59 = vsub.f32 %v2732_v20, %v1179_v34  ;;  %v1181_v15 = vpop.xlane.xlu1 %1180 }
 0x36b   : > { %v2863_v60 = vsub.f32 %v2735_v21, %v1181_v15  ;;  %2208 = vpow2.f32 %v1280_v33 }
 0x36c   : > { %v2199_v18 = vpop.eup %2198  ;;  %v1274_v50 = vmul.f32 1.442695, %v2860_v59  ;;  %1324 = vadd.xlane.f32.xlu1 %v2197_v44 }
 0x36d   : > { %v1276_v37 = vmul.f32 1.442695, %v2863_v60  ;;  %1334 = vadd.xlane.f32.xlu0 %v2199_v18  ;;  %v1191_v53 = vpop.xlane.xlu0 %1190  ;;  %v2201_v35 = vpop.eup %2200 }
 0x36e   : > { %2210 = vpow2.f32 %v1274_v50  ;;  %v2868_v62 = vsub.f32 %v2739_v23, %v1191_v53  ;;  %v1193_v20 = vpop.xlane.xlu1 %1192 }
 0x36f   : > { %v2872_v2 = vsub.f32 %v2743_v26, %v1193_v20  ;;  %2212 = vpow2.f32 %v1276_v37 }
 0x370   : > { %v2203_v21 = vpop.eup %2202  ;;  %v1286_v61 = vmul.f32 1.442695, %v2868_v62  ;;  %1336 = vadd.xlane.f32.xlu1 %v2201_v35 }
 0x371   : > { %v1288_v45 = vmul.f32 1.442695, %v2872_v2  ;;  %1330 = vadd.xlane.f32.xlu0 %v2203_v21  ;;  %v1187_v46 = vpop.xlane.xlu0 %1186  ;;  %v2205_v6 = vpop.eup %2204 }
 0x372   : > { %2214 = vpow2.f32 %v1286_v61  ;;  %v2877_v4 = vsub.f32 %v2748_v28, %v1187_v46  ;;  %v1189_v23 = vpop.xlane.xlu1 %1188 }
 0x373   : > { %v2880_v5 = vsub.f32 %v2751_v29, %v1189_v23  ;;  %2216 = vpow2.f32 %v1288_v45 }
 0x374   : > { %v2207_v26 = vpop.eup %2206  ;;  %v1282_v48 = vmul.f32 1.442695, %v2877_v4  ;;  %1332 = vadd.xlane.f32.xlu1 %v2205_v6 }
 0x375   : > { %v1284_v63 = vmul.f32 1.442695, %v2880_v5  ;;  %1342 = vadd.xlane.f32.xlu0 %v2207_v26  ;;  %v1195_v11 = vpop.xlane.xlu0 %1194  ;;  %v2209_v28 = vpop.eup %2208 }
 0x376   : > { %2218 = vpow2.f32 %v1282_v48  ;;  %v2885_v7 = vsub.f32 %v2756_v32, %v1195_v11 }
 0x377   : > { %v1197_v17 = vpop.xlane.xlu1 %1196  ;;  %2220 = vpow2.f32 %v1284_v63 }
 0x378   : > { %v2211_v10 = vpop.eup %2210  ;;  %v1290_v52 = vmul.f32 1.442695, %v2885_v7  ;;  %v2889_v29 = vsub.f32 %v2759_v36, %v1197_v17  ;;  %1344 = vadd.xlane.f32.xlu1 %v2209_v28 }
 0x379   : > { %1338 = vadd.xlane.f32.xlu0 %v2211_v10  ;;  %v1199_v22 = vpop.xlane.xlu0 %1198  ;;  %v2213_v32 = vpop.eup %2212 }
 0x37a   : > { %2222 = vpow2.f32 %v1290_v52  ;;  %v1292_v24 = vmul.f32 1.442695, %v2889_v29  ;;  %v2893_v12 = vsub.f32 %v2763_v38, %v1199_v22 }
 0x37b   : > { %v1201_v54 = vpop.xlane.xlu1 %1200 }
 0x37c   : > { %v2215_v13 = vpop.eup %2214  ;;  %2224 = vpow2.f32 %v1292_v24  ;;  %v1294_v57 = vmul.f32 1.442695, %v2893_v12  ;;  %v2897_v33 = vsub.f32 %v2767_v40, %v1201_v54  ;;  %1340 = vadd.xlane.f32.xlu1 %v2213_v32 }
 0x37d   : > { %1350 = vadd.xlane.f32.xlu0 %v2215_v13  ;;  %v2217_v34 = vpop.eup %2216 }
 0x37e   : > { %2226 = vpow2.f32 %v1294_v57  ;;  %v1296_v36 = vmul.f32 1.442695, %v2897_v33 }
 0x380   : > { %v2219_v15 = vpop.eup %2218  ;;  %2228 = vpow2.f32 %v1296_v36  ;;  %1352 = vadd.xlane.f32.xlu1 %v2217_v34 }
 0x381   : > { %1346 = vadd.xlane.f32.xlu0 %v2219_v15  ;;  %v2221_v38 = vpop.eup %2220 }
 0x384   : > { %v2223_v44 = vpop.eup %2222  ;;  %1348 = vadd.xlane.f32.xlu1 %v2221_v38 }
 0x385   : > { %1354 = vadd.xlane.f32.xlu0 %v2223_v44 }
 0x386   : > { %v2225_v18 = vpop.eup %2224 }
 0x388   : > { %v2227_v50 = vpop.eup %2226  ;;  %1356 = vadd.xlane.f32.xlu1 %v2225_v18 }
 0x389   : > { %1358 = vadd.xlane.f32.xlu0 %v2227_v50 }
 0x38a   : > { %v2229_v40 = vpop.eup %2228 }
 0x38c   : > { %1360 = vadd.xlane.f32.xlu1 %v2229_v40 }
 0x3d9   : > { %v1303_v37 = vpop.xlane.xlu0 %1302 }
 0x3da   : > { %2230 = vlog2.f32 %v1303_v37 }
 0x3dd   : > { %v1305_v53 = vpop.xlane.xlu1 %1304  ;;  %v1299_v20 = vpop.xlane.xlu0 %1298 }
 0x3de   : > { %2232 = vlog2.f32 %v1305_v53 }
 0x3df   : > { %2234 = vlog2.f32 %v1299_v20 }
 0x3e1   : > { %v1301_v35 = vpop.xlane.xlu1 %1300 }
 0x3e2   : > { %2236 = vlog2.f32 %v1301_v35  ;;  %v1311_v21 = vpop.xlane.xlu0 %1310 }
 0x3e3   : > { %2238 = vlog2.f32 %v1311_v21 }
 0x3e4   : > { %v2231_v61 = vpop.eup %2230 }
 0x3e5   : > { %v1313_v45 = vpop.xlane.xlu1 %1312  ;;  %v1367_v23 = vmul.f32 0.6931472, %v2231_v61 }
 0x3e6   : > { %2240 = vlog2.f32 %v1313_v45  ;;  %v1307_v46 = vpop.xlane.xlu0 %1306 }
 0x3e7   : > { %2242 = vlog2.f32 %v1307_v46  ;;  %v1428_v28 = vsub.f32 %v2772_v43, %v1367_v23 }
 0x3e8   : > { %v2233_v6 = vpop.eup %2232 }
 0x3e9   : > { %v2235_v26 = vpop.eup %2234  ;;  %v1369_v48 = vmul.f32 0.6931472, %v2233_v6  ;;  %v1309_v63 = vpop.xlane.xlu1 %1308 }
 0x3ea   : > { %2244 = vlog2.f32 %v1309_v63  ;;  %v1319_v11 = vpop.xlane.xlu0 %1318  ;;  %v1363_v10 = vmul.f32 0.6931472, %v2235_v26 }
 0x3eb   : > { %v1429_v17 = vsub.f32 %v2780_v39, %v1369_v48  ;;  %2246 = vlog2.f32 %v1319_v11 }
 0x3ec   : > { %v2237_v52 = vpop.eup %2236  ;;  %v1426_v57 = vsub.f32 %v2775_v47, %v1363_v10 }
 0x3ed   : > { %v2239_v22 = vpop.eup %2238  ;;  %v1825_v24 = vpack.c.bf16 %v1429_v17, %v1428_v28  ;;  %v1365_v32 = vmul.f32 0.6931472, %v2237_v52  ;;  %v1321_v54 = vpop.xlane.xlu1 %1320 }
 0x3ee   : > { %2248 = vlog2.f32 %v1321_v54  ;;  %v1315_v13 = vpop.xlane.xlu0 %1314  ;;  %v1375_v36 = vmul.f32 0.6931472, %v2239_v22 }
 0x3ef   : > { %1897 = vst [vmem:[%s2904_s23 + $0x8] sm:$0xff] %v1825_v24   ;;  %v1427_v43 = vsub.f32 %v2783_v55, %v1365_v32  ;;  %2250 = vlog2.f32 %v1315_v13 }
 0x3f0   : > { %v2241_v39 = vpop.eup %2240  ;;  %v1432_v50 = vsub.f32 %v2788_v58, %v1375_v36 }
 0x3f1   : > { %v2243_v34 = vpop.eup %2242  ;;  %v1820_v15 = vpack.c.bf16 %v1427_v43, %v1426_v57  ;;  %v1377_v38 = vmul.f32 0.6931472, %v2241_v39  ;;  %v1317_v44 = vpop.xlane.xlu1 %1316 }
 0x3f2   : > { %2252 = vlog2.f32 %v1317_v44  ;;  %v1327_v18 = vpop.xlane.xlu0 %1326  ;;  %v1371_v37 = vmul.f32 0.6931472, %v2243_v34 }
 0x3f3   : > { %1821 = vst [vmem:[%s2904_s23] sm:$0xff] %v1820_v15   ;;  %v1433_v40 = vsub.f32 %v2791_v0, %v1377_v38  ;;  %2254 = vlog2.f32 %v1327_v18 }
 0x3f4   : > { %v2245_v47 = vpop.eup %2244  ;;  %v1430_v61 = vsub.f32 %v2796_v3, %v1371_v37 }
 0x3f5   : > { %v2247_v53 = vpop.eup %2246  ;;  %v1835_v55 = vpack.c.bf16 %v1433_v40, %v1432_v50  ;;  %v1373_v20 = vmul.f32 0.6931472, %v2245_v47  ;;  %v1329_v35 = vpop.xlane.xlu1 %1328 }
 0x3f6   : > { %2256 = vlog2.f32 %v1329_v35  ;;  %v1323_v21 = vpop.xlane.xlu0 %1322  ;;  %v1383_v46 = vmul.f32 0.6931472, %v2247_v53 }
 0x3f7   : > { %1899 = vst [vmem:[%s2904_s23 + $0x18] sm:$0xff] %v1835_v55   ;;  %v1431_v45 = vsub.f32 %v2799_v9, %v1373_v20  ;;  %2258 = vlog2.f32 %v1323_v21 }
 0x3f8   : > { %v2249_v58 = vpop.eup %2248  ;;  %v1436_v63 = vsub.f32 %v2804_v16, %v1383_v46 }
 0x3f9   : > { %v2251_v23 = vpop.eup %2250  ;;  %v1830_v0 = vpack.c.bf16 %v1431_v45, %v1430_v61  ;;  %v1385_v6 = vmul.f32 0.6931472, %v2249_v58  ;;  %v1325_v26 = vpop.xlane.xlu1 %1324 }
 0x3fa   : > { %2260 = vlog2.f32 %v1325_v26  ;;  %v1335_v48 = vpop.xlane.xlu0 %1334  ;;  %v1379_v28 = vmul.f32 0.6931472, %v2251_v23 }
 0x3fb   : > { %1898 = vst [vmem:[%s2904_s23 + $0x10] sm:$0xff] %v1830_v0   ;;  %v1437_v11 = vsub.f32 %v2807_v19, %v1385_v6  ;;  %2262 = vlog2.f32 %v1335_v48 }
 0x3fc   : > { %v2253_v3 = vpop.eup %2252  ;;  %v1434_v24 = vsub.f32 %v2812_v25, %v1379_v28 }
 0x3fd   : > { %v2255_v17 = vpop.eup %2254  ;;  %v1845_v9 = vpack.c.bf16 %v1437_v11, %v1436_v63  ;;  %v1381_v10 = vmul.f32 0.6931472, %v2253_v3  ;;  %v1337_v52 = vpop.xlane.xlu1 %1336 }
 0x3fe   : > { %2264 = vlog2.f32 %v1337_v52  ;;  %v1331_v22 = vpop.xlane.xlu0 %1330  ;;  %v1391_v54 = vmul.f32 0.6931472, %v2255_v17 }
 0x3ff   : > { %1901 = vst [vmem:[%s2904_s23 + $0x28] sm:$0xff] %v1845_v9   ;;  %v1435_v32 = vsub.f32 %v2815_v30, %v1381_v10  ;;  %2266 = vlog2.f32 %v1331_v22 }
 0x400   : > { %v2257_v16 = vpop.eup %2256  ;;  %v1440_v39 = vsub.f32 %v2820_v42, %v1391_v54 }
 0x401   : > { %v2259_v13 = vpop.eup %2258  ;;  %v1840_v19 = vpack.c.bf16 %v1435_v32, %v1434_v24  ;;  %v1393_v57 = vmul.f32 0.6931472, %v2257_v16  ;;  %v1333_v43 = vpop.xlane.xlu1 %1332 }
 0x402   : > { %2268 = vlog2.f32 %v1333_v43  ;;  %v1343_v36 = vpop.xlane.xlu0 %1342  ;;  %v1387_v15 = vmul.f32 0.6931472, %v2259_v13 }
 0x403   : > { %1900 = vst [vmem:[%s2904_s23 + $0x20] sm:$0xff] %v1840_v19   ;;  %v1441_v34 = vsub.f32 %v2823_v49, %v1393_v57  ;;  %2270 = vlog2.f32 %v1343_v36 }
 0x404   : > { %v2261_v25 = vpop.eup %2260  ;;  %v1438_v40 = vsub.f32 %v2828_v41, %v1387_v15 }
 0x405   : > { %v2263_v38 = vpop.eup %2262  ;;  %v1855_v30 = vpack.c.bf16 %v1441_v34, %v1440_v39  ;;  %v1389_v44 = vmul.f32 0.6931472, %v2261_v25  ;;  %v1345_v18 = vpop.xlane.xlu1 %1344 }
 0x406   : > { %2272 = vlog2.f32 %v1345_v18  ;;  %v1339_v50 = vpop.xlane.xlu0 %1338  ;;  %v1399_v47 = vmul.f32 0.6931472, %v2263_v38 }
 0x407   : > { %1903 = vst [vmem:[%s2904_s23 + $0x38] sm:$0xff] %v1855_v30   ;;  %v1439_v37 = vsub.f32 %v2831_v56, %v1389_v44  ;;  %2274 = vlog2.f32 %v1339_v50 }
 0x408   : > { %v2265_v42 = vpop.eup %2264  ;;  %v1444_v21 = vsub.f32 %v2836_v1, %v1399_v47 }
 0x409   : > { %v2267_v53 = vpop.eup %2266  ;;  %v1850_v49 = vpack.c.bf16 %v1439_v37, %v1438_v40  ;;  %v1401_v55 = vmul.f32 0.6931472, %v2265_v42  ;;  %v1341_v20 = vpop.xlane.xlu1 %1340 }
 0x40a   : > { %2276 = vlog2.f32 %v1341_v20  ;;  %v1351_v35 = vpop.xlane.xlu0 %1350  ;;  %v1395_v45 = vmul.f32 0.6931472, %v2267_v53 }
 0x40b   : > { %1902 = vst [vmem:[%s2904_s23 + $0x30] sm:$0xff] %v1850_v49   ;;  %v1445_v61 = vsub.f32 %v2839_v8, %v1401_v55  ;;  %2278 = vlog2.f32 %v1351_v35 }
 0x40c   : > { %v2269_v41 = vpop.eup %2268  ;;  %v1442_v6 = vsub.f32 %v2844_v14, %v1395_v45 }
 0x40d   : > { %v2271_v46 = vpop.eup %2270  ;;  %v1865_v56 = vpack.c.bf16 %v1445_v61, %v1444_v21  ;;  %v1397_v58 = vmul.f32 0.6931472, %v2269_v41  ;;  %v1353_v23 = vpop.xlane.xlu1 %1352 }
 0x40e   : > { %2280 = vlog2.f32 %v1353_v23  ;;  %v1347_v0 = vpop.xlane.xlu0 %1346  ;;  %v1407_v48 = vmul.f32 0.6931472, %v2271_v46 }
 0x40f   : > { %1905 = vst [vmem:[%s2904_s23 + $0x48] sm:$0xff] %v1865_v56   ;;  %v1443_v26 = vsub.f32 %v2847_v51, %v1397_v58  ;;  %2282 = vlog2.f32 %v1347_v0 }
 0x410   : > { %v2273_v1 = vpop.eup %2272  ;;  %v1448_v17 = vsub.f32 %v2852_v27, %v1407_v48 }
 0x411   : > { %v2275_v63 = vpop.eup %2274  ;;  %v1860_v8 = vpack.c.bf16 %v1443_v26, %v1442_v6  ;;  %v1409_v11 = vmul.f32 0.6931472, %v2273_v1  ;;  %v1349_v28 = vpop.xlane.xlu1 %1348 }
 0x412   : > { %2284 = vlog2.f32 %v1349_v28  ;;  %v1355_v3 = vpop.xlane.xlu0 %1354  ;;  %v1403_v10 = vmul.f32 0.6931472, %v2275_v63 }
 0x413   : > { %1904 = vst [vmem:[%s2904_s23 + $0x40] sm:$0xff] %v1860_v8   ;;  %v1449_v9 = vsub.f32 %v2855_v31, %v1409_v11  ;;  %2286 = vlog2.f32 %v1355_v3 }
 0x414   : > { %v2277_v14 = vpop.eup %2276  ;;  %v1446_v54 = vsub.f32 %v2860_v59, %v1403_v10 }
 0x415   : > { %v2279_v52 = vpop.eup %2278  ;;  %v1875_v51 = vpack.c.bf16 %v1449_v9, %v1448_v17  ;;  %v1405_v22 = vmul.f32 0.6931472, %v2277_v14  ;;  %v1357_v24 = vpop.xlane.xlu1 %1356 }
 0x416   : > { %2288 = vlog2.f32 %v1357_v24  ;;  %v1359_v32 = vpop.xlane.xlu0 %1358  ;;  %v1415_v13 = vmul.f32 0.6931472, %v2279_v52 }
 0x417   : > { %1907 = vst [vmem:[%s2904_s23 + $0x58] sm:$0xff] %v1875_v51   ;;  %v1447_v16 = vsub.f32 %v2863_v60, %v1405_v22  ;;  %2290 = vlog2.f32 %v1359_v32 }
 0x418   : > { %v2281_v27 = vpop.eup %2280  ;;  %v1452_v36 = vsub.f32 %v2868_v62, %v1415_v13 }
 0x419   : > { %v2283_v31 = vpop.eup %2282  ;;  %v1870_v19 = vpack.c.bf16 %v1447_v16, %v1446_v54  ;;  %v1417_v57 = vmul.f32 0.6931472, %v2281_v27  ;;  %v1361_v43 = vpop.xlane.xlu1 %1360 }
 0x41a   : > { %2292 = vlog2.f32 %v1361_v43  ;;  %v1411_v34 = vmul.f32 0.6931472, %v2283_v31 }
 0x41b   : > { %1906 = vst [vmem:[%s2904_s23 + $0x50] sm:$0xff] %v1870_v19   ;;  %v1453_v39 = vsub.f32 %v2872_v2, %v1417_v57 }
 0x41c   : > { %v2285_v15 = vpop.eup %2284  ;;  %v1450_v38 = vsub.f32 %v2877_v4, %v1411_v34 }
 0x41d   : > { %v2287_v59 = vpop.eup %2286  ;;  %v1885_v25 = vpack.c.bf16 %v1453_v39, %v1452_v36  ;;  %v1413_v60 = vmul.f32 0.6931472, %v2285_v15 }
 0x41e   : > { %v1419_v44 = vmul.f32 0.6931472, %v2287_v59 }
 0x41f   : > { %1909 = vst [vmem:[%s2904_s23 + $0x68] sm:$0xff] %v1885_v25   ;;  %v1451_v30 = vsub.f32 %v2880_v5, %v1413_v60 }
 0x420   : > { %v2289_v18 = vpop.eup %2288  ;;  %v1454_v2 = vsub.f32 %v2885_v7, %v1419_v44 }
 0x421   : > { %v2291_v50 = vpop.eup %2290  ;;  %v1880_v40 = vpack.c.bf16 %v1451_v30, %v1450_v38  ;;  %v1421_v62 = vmul.f32 0.6931472, %v2289_v18 }
 0x422   : > { %v1423_v47 = vmul.f32 0.6931472, %v2291_v50 }
 0x423   : > { %1908 = vst [vmem:[%s2904_s23 + $0x60] sm:$0xff] %v1880_v40   ;;  %v1455_v37 = vsub.f32 %v2889_v29, %v1421_v62 }
 0x424   : > { %v2293_v42 = vpop.eup %2292  ;;  %v1456_v4 = vsub.f32 %v2893_v12, %v1423_v47 }
 0x425   : > { %v1890_v53 = vpack.c.bf16 %v1455_v37, %v1454_v2  ;;  %v1425_v49 = vmul.f32 0.6931472, %v2293_v42  ;;  %1625 = sbr.rel (!%p2439_p5) target bundleno = 1096 (0x448), region = 52 }
 0x427   : > { %1910 = vst [vmem:[%s2904_s23 + $0x70] sm:$0xff] %v1890_v53   ;;  %v1457_v5 = vsub.f32 %v2897_v33, %v1425_v49 }
 0x429   : > { %v1895_v55 = vpack.c.bf16 %v1457_v5, %v1456_v4 }
 0x42b   : > { %1911 = vst [vmem:[%s2904_s23 + $0x78] sm:$0xff] %v1895_v55  }
 0x42c   : > { %s3030_s22 = smov (!%p1628_p11, %s1627_s22), 32 }
 0x42d   : > { %s2959_s8 = sshll.u32 %s3030_s22, 6 }
 0x42e   : > { %s1632_s9 = ssub.s32 2048, %s2959_s8 }
 0x42f   : > { %1633 = vsyncadd %s2954_s29, %s1632_s9  ;;  %p1778_p12 = scmp.ne.s32.totalorder %s2959_s8, 0  ;;  %s1816_s13 = sshll.u32 %s2422_s28, 11 }
 0x430   : > { %s2968_s16 = scalar_lea.hbm %s3022_s7, %s1816_s13  ;;  %s1638_s15 = sshll.u32 %s2904_s23, 4  ;;  %s2971_s15 = int_to_ptr.vmem [resolvable:$true] %s1638_s15 }
 0x431   : > { %s2294_s17 = scalar_lea.vmem %s2971_s15, %s2959_s8  ;;  %s2358_s18 = smov [#allocation2]  }
 0x432   : > { %p2295_p13 = scmp.ne.s32.totalorder %s2971_s15, %s2294_s17  ;;  %s2298_s19 = sshll.u32 %s2358_s18, 4  ;;  %s2299_s19 = int_to_ptr.vmem [resolvable:$false] %s2298_s19 }
 0x433   : > { %s2300_s28 = scalar_lea.vmem %s2299_s19, 4096  ;;  %p2301_p2 = scmp.lt.s32.totalorder %s2971_s15, %s2299_s19 }
 0x434   : > { %p2296_p0 = pnand %p2295_p13, %p1778_p12  ;;  %p2302_p3 = scmp.lt.s32.totalorder %s2300_s28, %s2294_s17 }
 0x436   : > { %p2297_p1 = pneg %p2296_p0  ;;  %p2303_p4 = por %p2302_p3, %p2301_p2 }
 0x438   : > { %p2304_p5 = pnand %p2303_p4, %p2297_p1 }
 0x43a   : > { %2307 = shalt.err (!%p2304_p5)
}
 0x43b   : > { %s2308_s20 = scalar_lea.hbm %s2968_s16, %s2959_s8  ;;  %s2312_s22 = scalar_lea.hbm %s3022_s7, 3072 }
 0x43c   : > { %p2309_p7 = scmp.ne.s32.totalorder %s2968_s16, %s2308_s20  ;;  %p2313_p10 = scmp.lt.u32.totalorder %s2968_s16, %s3022_s7 }
 0x43d   : > { %p2314_p11 = scmp.lt.u32.totalorder %s2312_s22, %s2308_s20  ;;  %p2316_p0 = scmp.lt.u32.totalorder %s2308_s20, %s2968_s16 }
 0x43e   : > { %p2310_p8 = pnand %p2309_p7, %p1778_p12 }
 0x43f   : > { %p2315_p13 = por %p2314_p11, %p2313_p10 }
 0x440   : > { %p2311_p9 = pneg %p2310_p8 }
 0x441   : > { %p2317_p1 = por %p2316_p0, %p2315_p13 }
 0x443   : > { %p2318_p2 = pnand %p2317_p1, %p2311_p9 }
 0x445   : > { %2321 = shalt.err (!%p2318_p2)
}
 0x446   : > { %s2359_s14 = smov 64   ;;  %s2360_s11 = smov 4  }
 0x447   : > { %1644 = dma.vmem_to_hbm [thread:$0]  (%p1778_p12), %s2971_s15, %s2959_s8, %s2968_s16, %s2954_s29, %s2359_s14, %s2359_s14, %s2360_s11  }
 0x448 PF: > { %p2114_p3 = scmp.ge.s32.totalorder %s2356_s27, 2  ;;  %s1653_s17 = sand.u32 1, %s2344_s24  }
 0x449   : > { %s1654_s18 = scalar_lea.sflag [#allocation3], %s1653_s17 }
 0x44a   : > { %p2111_p4 = pnand %p2114_p3, %p2443_p6 }
 0x44c   : > { %2339 = dma.done.wait (!%p2111_p4), %s1654_s18, 2048  }
 0x44d   : > { %2341 = vsyncadd (!%p2111_p4), %s1654_s18, 4294965248  ;;  %p17_p5 = scmp.ge.s32.totalorder %s2426_s30, 4   ;;  %s3025_s24 = smov %s2348_s25 }
 0x44e   : > { %s3026_s25 = smov %s2352_s26  ;;  %s3027_s26 = smov %s2437_s10 }
 0x44f   : > { %s3028_s27 = smov %s2426_s30  ;;  %19 = sbr.rel (!%p17_p5) target bundleno = 3 (0x3), region = 83 }
 0x456   :  { %1659 = vsyncpa [#allocation3], 1 }
 0x457   :  { %1661 = vsyncpa [#allocation3 + $0x1], 1 }

</bundles_post_ra>
